<compile_context>
chip_gen: v6e
topology: v6e:2x2x1
jax: 0.10.0
libtpu: 0.0.40
codegen_flags: <defaults>
</compile_context>

<pallas_src>
import jax
import jax.numpy as jnp
from jax.experimental import pallas as pl
from jax.experimental.pallas import tpu as pltpu


LANE = 128  # lane-dense padding for channel / class dims


# ---------------------------------------------------------------------------
# Fused Pallas kernel: whole BottleneckVGG forward for one image per grid step
# ---------------------------------------------------------------------------
def _fused_vgg_kernel(im1_ref, w1_ref, s1_ref, b1_ref,
                      w2_ref, s2_ref, b2_ref, wc_ref, bc_ref,
                      o_ref, pad_ref):
    """im1_ref: (1,256,128) bf16  block-1 im2col, rows = (dy*2+dx)*64 + (ho*8+wo),
                                   cols = (conv tap, cin) packed then zero-padded.
       w1_ref : (128,128)   bf16  folded Qa/W*/Qg, out channels replicated 9x.
       s1,b1  : (1,128)     f32   fused BN scale / (conv-bias@Qg)*scale + BN bias, replicated.
       w2_ref : (128,128)   bf16  folded block-2 weights, rows = (tap, cin2) packed.
       s2,b2  : (1,128)     f32
       wc_ref : (4,128,128) bf16  classifier weight per post-AvgPool spatial position.
       bc_ref : (1,128)     f32   classifier bias (b @ Rg), zero-padded.
       o_ref  : (1,1,128)   f32   logits, zero-padded to 128 classes.
       pad_ref: (10,24,128) f32   VMEM scratch: zero-haloed block-1 output (real data at
                                   rows 1:9, cols 8:16)."""
    # ---- Block 1: rotated 3x3 conv as ONE K=128 MXU matmul (9 taps x 3 ch packed) ----
    z1 = jnp.dot(im1_ref[0], w1_ref[...], preferred_element_type=jnp.float32)   # (256,128)
    z1 = jnp.maximum(z1 * s1_ref[...] + b1_ref[...], 0.0)                       # BN + ReLU
    # 2x2 max-pool on the VPU: rows are pool-parity-major -> max of 4 contiguous slabs.
    z1 = z1.reshape(4, 64, LANE)
    p1 = jnp.maximum(jnp.maximum(z1[0], z1[1]), jnp.maximum(z1[2], z1[3]))      # (64,128)

    # ---- Stage the pooled 8x8 map into a zero-haloed scratch (no HBM round trip) ----
    pad_ref[...] = jnp.zeros_like(pad_ref)          # re-zero every step (megacore-safe)
    pad_ref[1:9, 8:16, :] = p1.reshape(8, 8, LANE)  # aligned 8-sublane interior store

    # ---- Block 2: pack the 9 taps' (replicated) channels into one K=128 operand ----
    lane = jax.lax.broadcasted_iota(jnp.int32, (64, LANE), 1)
    op = jnp.zeros((64, LANE), jnp.float32)
    for t in range(9):
        ky, kx = t // 3, t % 3
        win = pad_ref[ky:ky + 8, kx + 7:kx + 15, :].reshape(64, LANE)
        op = jnp.where((lane >= 8 * t) & (lane < 8 * (t + 1)), win, op)
    z2 = jnp.dot(op.astype(jnp.bfloat16), w2_ref[...],
                 preferred_element_type=jnp.float32)                            # (64,128)
    z2 = jnp.maximum(z2 * s2_ref[...] + b2_ref[...], 0.0)
    z3 = z2.reshape(8, 8, LANE)                                                 # (h2,w2,C)

    # ---- MaxPool2d(2) + AvgPool2d(2) + classifier: VPU pooling + 4 tiny MXU matmuls ----
    acc = bc_ref[...]                                                           # (1,128) f32
    for p in range(4):
        ha, wa = p // 2, p % 2
        blk = z3[4 * ha:4 * ha + 4, 4 * wa:4 * wa + 4, :]                       # (4,4,128)
        b4 = blk.reshape(2, 2, 4, LANE)
        bh = jnp.maximum(b4[:, 0], b4[:, 1])                                    # (2,4,128)
        m0 = jnp.maximum(bh[:, 0:1, :], bh[:, 1:2, :])                          # (2,1,128)
        m1 = jnp.maximum(bh[:, 2:3, :], bh[:, 3:4, :])                          # (2,1,128)
        row = (0.25 * (m0[0] + m0[1] + m1[0] + m1[1])).astype(jnp.bfloat16)     # (1,128)
        acc = acc + jnp.dot(row, wc_ref[p], preferred_element_type=jnp.float32)
    o_ref[0, :, :] = acc


def _build_im2col_block1(x_nchw):
    """Block-1 im2col with pool-parity-major row order: row = (dy*2+dx)*64 + (ho*8+wo),
    col = (ky*3+kx)*cin + c; zero-padded to 128 cols, bf16.  Tiny XLA glue (input is 3 KiB)."""
    N, Cin, H, W = x_nchw.shape
    Ho, Wo = H // 2, W // 2
    xh = jnp.transpose(x_nchw, (0, 2, 3, 1)).astype(jnp.float32)       # NHWC
    xp = jnp.pad(xh, ((0, 0), (1, 1), (1, 1), (0, 0)))
    taps = [xp[:, ky:ky + H, kx:kx + W, :] for ky in range(3) for kx in range(3)]
    im = jnp.concatenate(taps, axis=-1)                                # (N,H,W,9*Cin)
    im = im.reshape(N, Ho, 2, Wo, 2, 9 * Cin)
    im = jnp.transpose(im, (0, 2, 4, 1, 3, 5)).reshape(N, H * W, 9 * Cin)
    im = jnp.pad(im, ((0, 0), (0, 0), (0, LANE - 9 * Cin)))
    return im.astype(jnp.bfloat16)


def bottleneck_vgg_forward(x_nchw, folded, num_classes):
    assert x_nchw.shape[1:] == (3, 16, 16), "kernel specialized to cfg [(3,8),(8,16)] @ 16x16"
    N = x_nchw.shape[0]
    HW = x_nchw.shape[2] * x_nchw.shape[3]
    im1 = _build_im2col_block1(x_nchw)                                 # (N, 256, 128) bf16
    out = pl.pallas_call(
        _fused_vgg_kernel,
        out_shape=jax.ShapeDtypeStruct((N, 1, LANE), jnp.float32),
        grid=(N,),
        in_specs=[
            pl.BlockSpec((1, HW, LANE), lambda n: (n, 0, 0)),
            pl.BlockSpec((LANE, LANE), lambda n: (0, 0)),
            pl.BlockSpec((1, LANE), lambda n: (0, 0)),
            pl.BlockSpec((1, LANE), lambda n: (0, 0)),
            pl.BlockSpec((LANE, LANE), lambda n: (0, 0)),
            pl.BlockSpec((1, LANE), lambda n: (0, 0)),
            pl.BlockSpec((1, LANE), lambda n: (0, 0)),
            pl.BlockSpec((4, LANE, LANE), lambda n: (0, 0, 0)),
            pl.BlockSpec((1, LANE), lambda n: (0, 0)),
        ],
        out_specs=pl.BlockSpec((1, 1, LANE), lambda n: (n, 0, 0)),
        scratch_shapes=[pltpu.VMEM((10, 24, LANE), jnp.float32)],
        compiler_params=pltpu.CompilerParams(
            dimension_semantics=("parallel",),       # images independent -> both v7x cores
            vmem_limit_bytes=32 * 1024 * 1024,       # actual use ~1 MiB; fits v7x's 64 MiB
        ),
    )(im1, folded["w1"], folded["s1"], folded["b1"],
      folded["w2"], folded["s2"], folded["b2"], folded["wc"], folded["bc"])
    return out.reshape(N, LANE)[:, :num_classes]


# ---------------------------------------------------------------------------
# Deterministic parameter construction (same parameterization / conventions as before:
# rotations act as right-multiplications on channel row-vectors — self-consistent here).
# ---------------------------------------------------------------------------
def init_params(key, block_cfg, num_classes, flat_features):
    params = {"blocks": []}
    for (cin, cout) in block_cfg:
        key, k1, k2, k3, k4, k5, k6, k7, k8 = jax.random.split(key, 9)
        qa = jax.random.normal(k1, (cin, cin), jnp.float32) / jnp.sqrt(float(cin))
        w = jax.random.normal(k2, (cout, cin, 3, 3), jnp.float32) * jnp.sqrt(2.0 / (9.0 * cin))
        w_mat = jnp.transpose(w, (2, 3, 1, 0)).reshape(9 * cin, cout)   # rows = (ky,kx,cin)
        conv_b = jax.random.normal(k3, (cout,), jnp.float32) * 0.01
        qg = jax.random.normal(k4, (cout, cout), jnp.float32) / jnp.sqrt(float(cout))
        gamma = 1.0 + 0.1 * jax.random.normal(k5, (cout,), jnp.float32)
        beta = 0.1 * jax.random.normal(k6, (cout,), jnp.float32)
        r_mean = 0.1 * jax.random.normal(k7, (cout,), jnp.float32)
        r_var = 0.9 + jnp.abs(jax.random.normal(k8, (cout,), jnp.float32)) * 0.2
        bn_scale = gamma / jnp.sqrt(r_var + 1e-5)
        bn_bias = beta - r_mean * bn_scale
        params["blocks"].append(dict(cin=cin, cout=cout, Qa=qa, W=w_mat, conv_b=conv_b,
                                     Qg=qg, bn_scale=bn_scale, bn_bias=bn_bias))
    key, k1, k2, k3, k4 = jax.random.split(key, 5)
    params["cls_Ra"] = (jax.random.normal(k1, (flat_features, flat_features), jnp.float32)
                        / jnp.sqrt(float(flat_features)))
    w_lin = jax.random.normal(k2, (num_classes, flat_features), jnp.float32) * 0.01
    params["cls_W"] = w_lin.T                                           # (in, out)
    params["cls_b"] = jax.random.normal(k3, (num_classes,), jnp.float32) * 0.01
    params["cls_Rg"] = (jax.random.normal(k4, (num_classes, num_classes), jnp.float32)
                        / jnp.sqrt(float(num_classes)))
    return params


# ---------------------------------------------------------------------------
# Offline algebraic folding of rotations / BN / replication / classifier layout
# ---------------------------------------------------------------------------
def fold_params(params, num_classes):
    b1, b2 = params["blocks"]
    cin1, cout1 = b1["cin"], b1["cout"]          # 3, 8   (9*cin1 = 27  <= 128)
    cin2, cout2 = b2["cin"], b2["cout"]          # 8, 16  (9*cin2 = 72  <= 128)
    assert 9 * cin1 <= LANE and 9 * cin2 <= LANE and 9 * cout1 <= LANE and cout2 <= LANE

    # Block 1: fold Qa/W*/Qg; replicate output channels 9x so block 2 can lane-pack its taps.
    wf1 = jnp.einsum("ij,tjk,kl->til", b1["Qa"], b1["W"].reshape(9, cin1, cout1), b1["Qg"])
    bi1 = (b1["conv_b"] @ b1["Qg"]) * b1["bn_scale"] + b1["bn_bias"]
    w1 = jnp.zeros((LANE, LANE), jnp.float32).at[:9 * cin1, :9 * cout1].set(
        jnp.tile(wf1.reshape(9 * cin1, cout1), (1, 9)))
    s1 = jnp.zeros((1, LANE), jnp.float32).at[0, :9 * cout1].set(jnp.tile(b1["bn_scale"], 9))
    b1p = jnp.zeros((1, LANE), jnp.float32).at[0, :9 * cout1].set(jnp.tile(bi1, 9))

    # Block 2: rows packed as (tap, cin2).
    wf2 = jnp.einsum("ij,tjk,kl->til", b2["Qa"], b2["W"].reshape(9, cin2, cout2), b2["Qg"])
    bi2 = (b2["conv_b"] @ b2["Qg"]) * b2["bn_scale"] + b2["bn_bias"]
    w2 = jnp.zeros((LANE, LANE), jnp.float32).at[:9 * cin2, :cout2].set(
        wf2.reshape(9 * cin2, cout2))
    s2 = jnp.zeros((1, LANE), jnp.float32).at[0, :cout2].set(b2["bn_scale"])
    b2p = jnp.zeros((1, LANE), jnp.float32).at[0, :cout2].set(bi2)

    # Classifier: Ra @ W @ Rg and b @ Rg; AvgPool2d(2) is done in-kernel, so reorganize the
    # weight per post-avgpool spatial position p = ha*Wa + wa (NCHW .view flatten order).
    Ha = Wa = 2
    ncls = num_classes
    w_cls = params["cls_Ra"] @ params["cls_W"] @ params["cls_Rg"]       # (cout2*Ha*Wa, ncls)
    b_cls = params["cls_b"] @ params["cls_Rg"]
    w_pos = jnp.transpose(w_cls.reshape(cout2, Ha, Wa, ncls), (1, 2, 0, 3)).reshape(
        Ha * Wa, cout2, ncls)
    wc = jnp.zeros((Ha * Wa, LANE, LANE), jnp.float32).at[:, :cout2, :ncls].set(w_pos)
    bc = jnp.zeros((1, LANE), jnp.float32).at[0, :ncls].set(b_cls)

    return dict(w1=w1.astype(jnp.bfloat16), s1=s1, b1=b1p,
                w2=w2.astype(jnp.bfloat16), s2=s2, b2=b2p,
                wc=wc.astype(jnp.bfloat16), bc=bc)


# ---------------------------------------------------------------------------
# Pure-JAX f32 reference (standard ordering) used as a self-check
# ---------------------------------------------------------------------------
def reference_forward(x_nchw, params, num_classes):
    x = jnp.transpose(x_nchw, (0, 2, 3, 1)).astype(jnp.float32)
    for blk in params["blocks"]:
        cin, cout = blk["cin"], blk["cout"]
        wf = jnp.einsum("ij,tjk,kl->til", blk["Qa"], blk["W"].reshape(9, cin, cout), blk["Qg"])
        bias = (blk["conv_b"] @ blk["Qg"]) * blk["bn_scale"] + blk["bn_bias"]
        N, H, W, _ = x.shape
        xp = jnp.pad(x, ((0, 0), (1, 1), (1, 1), (0, 0)))
        z = jnp.zeros((N, H, W, cout), jnp.float32)
        for t in range(9):
            ky, kx = t // 3, t % 3
            z = z + jnp.einsum("nhwc,co->nhwo", xp[:, ky:ky + H, kx:kx + W, :], wf[t])
        z = jnp.maximum(z * blk["bn_scale"] + bias, 0.0)
        x = jnp.max(z.reshape(N, H // 2, 2, W // 2, 2, cout), axis=(2, 4))
    N, Hf, Wf, C = x.shape
    x = x.reshape(N, Hf // 2, 2, Wf // 2, 2, C).mean(axis=(2, 4))       # AvgPool2d(2)
    flat = jnp.transpose(x, (0, 3, 1, 2)).reshape(N, -1)                # NCHW flatten
    w_cls = params["cls_Ra"] @ params["cls_W"] @ params["cls_Rg"]
    b_cls = params["cls_b"] @ params["cls_Rg"]
    return flat @ w_cls + b_cls


if __name__ == "__main__":
    key = jax.random.PRNGKey(0)
    key_x, key_p = jax.random.split(key)

    # Two conv blocks (3->8, 8->16), each with MaxPool2d(2); input 16x16 -> 8x8 -> 4x4,
    # AvgPool2d(2) -> 2x2, flatten 16*2*2 = 64 -> rotated classifier to 10 classes.
    block_cfg = [(3, 8), (8, 16)]
    num_classes = 10
    in_hw = 16
    flat_features = 16 * 2 * 2

    x = jax.random.normal(key_x, (2, 3, in_hw, in_hw), jnp.float32)     # NCHW, like PyTorch
    params = init_params(key_p, block_cfg, num_classes, flat_features)
    folded = fold_params(params, num_classes)

    fwd = jax.jit(bottleneck_vgg_forward, static_argnums=2)
    out = fwd(x, folded, num_classes)
    jax.block_until_ready(out)
    assert out.shape == (2, num_classes), out.shape

    # Loose tolerance: the kernel path uses bf16 MXU matmuls (inputs/weights), f32 epilogues.
    ref = reference_forward(x, params, num_classes)
    err = float(jnp.max(jnp.abs(out - ref)))
    assert err < 1e-1, f"numerical mismatch vs f32 reference: {err}"
    print("KERNEL_OK")
</pallas_src>

<mosaic_0001>
module attributes {stable_mosaic.version = 11 : i64} {
  func.func @_fused_vgg_kernel(%arg0: i32, %arg1: memref<1x256x128xbf16, #tpu.memory_space<vmem>>, %arg2: memref<128x128xbf16, #tpu.memory_space<vmem>>, %arg3: memref<1x128xf32, #tpu.memory_space<vmem>>, %arg4: memref<1x128xf32, #tpu.memory_space<vmem>>, %arg5: memref<128x128xbf16, #tpu.memory_space<vmem>>, %arg6: memref<1x128xf32, #tpu.memory_space<vmem>>, %arg7: memref<1x128xf32, #tpu.memory_space<vmem>>, %arg8: memref<4x128x128xbf16, #tpu.memory_space<vmem>>, %arg9: memref<1x128xf32, #tpu.memory_space<vmem>>, %arg10: memref<1x1x128xf32, #tpu.memory_space<vmem>>, %arg11: memref<10x24x128xf32, #tpu.memory_space<vmem>>) attributes {dimension_semantics = [#tpu.dimension_semantics<parallel>], iteration_bounds = array<i64: 2>, scalar_prefetch = 0 : i64, scratch_operands = 1 : i64, tpu.core_type = #tpu.core_type<tc>, window_params = [{transform_indices = @transform_0, window_bounds = array<i64: 1, 256, 128>}, {pipeline_mode = #tpu.pipeline_mode<synchronous>, transform_indices = @transform_1, window_bounds = array<i64: 128, 128>}, {pipeline_mode = #tpu.pipeline_mode<synchronous>, transform_indices = @transform_2, window_bounds = array<i64: 1, 128>}, {pipeline_mode = #tpu.pipeline_mode<synchronous>, transform_indices = @transform_3, window_bounds = array<i64: 1, 128>}, {pipeline_mode = #tpu.pipeline_mode<synchronous>, transform_indices = @transform_4, window_bounds = array<i64: 128, 128>}, {pipeline_mode = #tpu.pipeline_mode<synchronous>, transform_indices = @transform_5, window_bounds = array<i64: 1, 128>}, {pipeline_mode = #tpu.pipeline_mode<synchronous>, transform_indices = @transform_6, window_bounds = array<i64: 1, 128>}, {pipeline_mode = #tpu.pipeline_mode<synchronous>, transform_indices = @transform_7, window_bounds = array<i64: 4, 128, 128>}, {pipeline_mode = #tpu.pipeline_mode<synchronous>, transform_indices = @transform_8, window_bounds = array<i64: 1, 128>}, {transform_indices = @transform_9, window_bounds = array<i64: 1, 1, 128>}]} {
    %c0 = arith.constant 0 : index
    %c0_0 = arith.constant 0 : index
    %c0_1 = arith.constant 0 : index
    %0 = vector.load %arg1[%c0, %c0_0, %c0_1] : memref<1x256x128xbf16, #tpu.memory_space<vmem>>, vector<1x256x128xbf16>
    %1 = vector.shape_cast %0 : vector<1x256x128xbf16> to vector<256x128xbf16>
    %c0_2 = arith.constant 0 : index
    %c0_3 = arith.constant 0 : index
    %2 = vector.load %arg2[%c0_2, %c0_3] : memref<128x128xbf16, #tpu.memory_space<vmem>>, vector<128x128xbf16>
    %cst = arith.constant dense<0.000000e+00> : vector<256x128xf32>
    %3 = tpu.matmul %1, %2, %cst {dimension_numbers = #tpu.dot_dimension_numbers<[1], [0], [0], [1], [0, 0, 1, 1], [], []>} : vector<256x128xbf16>, vector<128x128xbf16>, vector<256x128xf32> -> vector<256x128xf32>
    %c0_4 = arith.constant 0 : index
    %c0_5 = arith.constant 0 : index
    %4 = vector.load %arg3[%c0_4, %c0_5] : memref<1x128xf32, #tpu.memory_space<vmem>>, vector<1x128xf32>
    %5 = vector.broadcast %4 : vector<1x128xf32> to vector<256x128xf32>
    %6 = arith.mulf %3, %5 : vector<256x128xf32>
    %c0_6 = arith.constant 0 : index
    %c0_7 = arith.constant 0 : index
    %7 = vector.load %arg4[%c0_6, %c0_7] : memref<1x128xf32, #tpu.memory_space<vmem>>, vector<1x128xf32>
    %8 = vector.broadcast %7 : vector<1x128xf32> to vector<256x128xf32>
    %9 = arith.addf %6, %8 : vector<256x128xf32>
    %cst_8 = arith.constant 0.000000e+00 : f32
    %10 = vector.broadcast %cst_8 : f32 to vector<256x128xf32>
    %11 = arith.maximumf %9, %10 : vector<256x128xf32>
    %12 = vector.shape_cast %11 : vector<256x128xf32> to vector<4x64x128xf32>
    %13 = vector.extract_strided_slice %12 {offsets = [0, 0, 0], sizes = [1, 64, 128], strides = [1, 1, 1]} : vector<4x64x128xf32> to vector<1x64x128xf32>
    %14 = vector.shape_cast %13 : vector<1x64x128xf32> to vector<64x128xf32>
    %15 = vector.extract_strided_slice %12 {offsets = [1, 0, 0], sizes = [1, 64, 128], strides = [1, 1, 1]} : vector<4x64x128xf32> to vector<1x64x128xf32>
    %16 = vector.shape_cast %15 : vector<1x64x128xf32> to vector<64x128xf32>
    %17 = arith.maximumf %14, %16 : vector<64x128xf32>
    %18 = vector.extract_strided_slice %12 {offsets = [2, 0, 0], sizes = [1, 64, 128], strides = [1, 1, 1]} : vector<4x64x128xf32> to vector<1x64x128xf32>
    %19 = vector.shape_cast %18 : vector<1x64x128xf32> to vector<64x128xf32>
    %20 = vector.extract_strided_slice %12 {offsets = [3, 0, 0], sizes = [1, 64, 128], strides = [1, 1, 1]} : vector<4x64x128xf32> to vector<1x64x128xf32>
    %21 = vector.shape_cast %20 : vector<1x64x128xf32> to vector<64x128xf32>
    %22 = arith.maximumf %19, %21 : vector<64x128xf32>
    %23 = arith.maximumf %17, %22 : vector<64x128xf32>
    %cst_9 = arith.constant 0.000000e+00 : f32
    %24 = vector.broadcast %cst_9 : f32 to vector<10x24x128xf32>
    %c0_10 = arith.constant 0 : index
    %c0_11 = arith.constant 0 : index
    %c0_12 = arith.constant 0 : index
    %25 = vector.load %arg11[%c0_10, %c0_11, %c0_12] : memref<10x24x128xf32, #tpu.memory_space<vmem>>, vector<10x24x128xf32>
    tpu.vector_store %arg11[%c0_10, %c0_11, %c0_12], %24 {strides = array<i32>} : memref<10x24x128xf32, #tpu.memory_space<vmem>>, vector<10x24x128xf32>,
    %26 = vector.shape_cast %23 : vector<64x128xf32> to vector<8x8x128xf32>
    %c1 = arith.constant 1 : index
    %c8 = arith.constant 8 : index
    %c0_13 = arith.constant 0 : index
    %27 = vector.load %arg11[%c1, %c8, %c0_13] : memref<10x24x128xf32, #tpu.memory_space<vmem>>, vector<8x8x128xf32>
    tpu.vector_store %arg11[%c1, %c8, %c0_13], %26 {strides = array<i32>} : memref<10x24x128xf32, #tpu.memory_space<vmem>>, vector<8x8x128xf32>,
    %28 = tpu.iota {dimensions = array<i32: 1>} : vector<64x128xi32>
    %cst_14 = arith.constant 0.000000e+00 : f32
    %29 = vector.broadcast %cst_14 : f32 to vector<64x128xf32>
    %c0_15 = arith.constant 0 : index
    %c7 = arith.constant 7 : index
    %c0_16 = arith.constant 0 : index
    %30 = vector.load %arg11[%c0_15, %c7, %c0_16] : memref<10x24x128xf32, #tpu.memory_space<vmem>>, vector<8x8x128xf32>
    %31 = vector.shape_cast %30 : vector<8x8x128xf32> to vector<64x128xf32>
    %c0_i32 = arith.constant 0 : i32
    %32 = vector.broadcast %c0_i32 : i32 to vector<64x128xi32>
    %33 = arith.cmpi sge, %28, %32 : vector<64x128xi32>
    %c8_i32 = arith.constant 8 : i32
    %34 = vector.broadcast %c8_i32 : i32 to vector<64x128xi32>
    %35 = arith.cmpi slt, %28, %34 : vector<64x128xi32>
    %36 = arith.andi %33, %35 : vector<64x128xi1>
    %37 = arith.select %36, %31, %29 : vector<64x128xi1>, vector<64x128xf32>
    %c0_17 = arith.constant 0 : index
    %c8_18 = arith.constant 8 : index
    %c0_19 = arith.constant 0 : index
    %38 = vector.load %arg11[%c0_17, %c8_18, %c0_19] : memref<10x24x128xf32, #tpu.memory_space<vmem>>, vector<8x8x128xf32>
    %39 = vector.shape_cast %38 : vector<8x8x128xf32> to vector<64x128xf32>
    %c8_i32_20 = arith.constant 8 : i32
    %40 = vector.broadcast %c8_i32_20 : i32 to vector<64x128xi32>
    %41 = arith.cmpi sge, %28, %40 : vector<64x128xi32>
    %c16_i32 = arith.constant 16 : i32
    %42 = vector.broadcast %c16_i32 : i32 to vector<64x128xi32>
    %43 = arith.cmpi slt, %28, %42 : vector<64x128xi32>
    %44 = arith.andi %41, %43 : vector<64x128xi1>
    %45 = arith.select %44, %39, %37 : vector<64x128xi1>, vector<64x128xf32>
    %c0_21 = arith.constant 0 : index
    %c9 = arith.constant 9 : index
    %c0_22 = arith.constant 0 : index
    %46 = vector.load %arg11[%c0_21, %c9, %c0_22] : memref<10x24x128xf32, #tpu.memory_space<vmem>>, vector<8x8x128xf32>
    %47 = vector.shape_cast %46 : vector<8x8x128xf32> to vector<64x128xf32>
    %c16_i32_23 = arith.constant 16 : i32
    %48 = vector.broadcast %c16_i32_23 : i32 to vector<64x128xi32>
    %49 = arith.cmpi sge, %28, %48 : vector<64x128xi32>
    %c24_i32 = arith.constant 24 : i32
    %50 = vector.broadcast %c24_i32 : i32 to vector<64x128xi32>
    %51 = arith.cmpi slt, %28, %50 : vector<64x128xi32>
    %52 = arith.andi %49, %51 : vector<64x128xi1>
    %53 = arith.select %52, %47, %45 : vector<64x128xi1>, vector<64x128xf32>
    %c1_24 = arith.constant 1 : index
    %c7_25 = arith.constant 7 : index
    %c0_26 = arith.constant 0 : index
    %54 = vector.load %arg11[%c1_24, %c7_25, %c0_26] : memref<10x24x128xf32, #tpu.memory_space<vmem>>, vector<8x8x128xf32>
    %55 = vector.shape_cast %54 : vector<8x8x128xf32> to vector<64x128xf32>
    %c24_i32_27 = arith.constant 24 : i32
    %56 = vector.broadcast %c24_i32_27 : i32 to vector<64x128xi32>
    %57 = arith.cmpi sge, %28, %56 : vector<64x128xi32>
    %c32_i32 = arith.constant 32 : i32
    %58 = vector.broadcast %c32_i32 : i32 to vector<64x128xi32>
    %59 = arith.cmpi slt, %28, %58 : vector<64x128xi32>
    %60 = arith.andi %57, %59 : vector<64x128xi1>
    %61 = arith.select %60, %55, %53 : vector<64x128xi1>, vector<64x128xf32>
    %c1_28 = arith.constant 1 : index
    %c8_29 = arith.constant 8 : index
    %c0_30 = arith.constant 0 : index
    %62 = vector.load %arg11[%c1_28, %c8_29, %c0_30] : memref<10x24x128xf32, #tpu.memory_space<vmem>>, vector<8x8x128xf32>
    %63 = vector.shape_cast %62 : vector<8x8x128xf32> to vector<64x128xf32>
    %c32_i32_31 = arith.constant 32 : i32
    %64 = vector.broadcast %c32_i32_31 : i32 to vector<64x128xi32>
    %65 = arith.cmpi sge, %28, %64 : vector<64x128xi32>
    %c40_i32 = arith.constant 40 : i32
    %66 = vector.broadcast %c40_i32 : i32 to vector<64x128xi32>
    %67 = arith.cmpi slt, %28, %66 : vector<64x128xi32>
    %68 = arith.andi %65, %67 : vector<64x128xi1>
    %69 = arith.select %68, %63, %61 : vector<64x128xi1>, vector<64x128xf32>
    %c1_32 = arith.constant 1 : index
    %c9_33 = arith.constant 9 : index
    %c0_34 = arith.constant 0 : index
    %70 = vector.load %arg11[%c1_32, %c9_33, %c0_34] : memref<10x24x128xf32, #tpu.memory_space<vmem>>, vector<8x8x128xf32>
    %71 = vector.shape_cast %70 : vector<8x8x128xf32> to vector<64x128xf32>
    %c40_i32_35 = arith.constant 40 : i32
    %72 = vector.broadcast %c40_i32_35 : i32 to vector<64x128xi32>
    %73 = arith.cmpi sge, %28, %72 : vector<64x128xi32>
    %c48_i32 = arith.constant 48 : i32
    %74 = vector.broadcast %c48_i32 : i32 to vector<64x128xi32>
    %75 = arith.cmpi slt, %28, %74 : vector<64x128xi32>
    %76 = arith.andi %73, %75 : vector<64x128xi1>
    %77 = arith.select %76, %71, %69 : vector<64x128xi1>, vector<64x128xf32>
    %c2 = arith.constant 2 : index
    %c7_36 = arith.constant 7 : index
    %c0_37 = arith.constant 0 : index
    %78 = vector.load %arg11[%c2, %c7_36, %c0_37] : memref<10x24x128xf32, #tpu.memory_space<vmem>>, vector<8x8x128xf32>
    %79 = vector.shape_cast %78 : vector<8x8x128xf32> to vector<64x128xf32>
    %c48_i32_38 = arith.constant 48 : i32
    %80 = vector.broadcast %c48_i32_38 : i32 to vector<64x128xi32>
    %81 = arith.cmpi sge, %28, %80 : vector<64x128xi32>
    %c56_i32 = arith.constant 56 : i32
    %82 = vector.broadcast %c56_i32 : i32 to vector<64x128xi32>
    %83 = arith.cmpi slt, %28, %82 : vector<64x128xi32>
    %84 = arith.andi %81, %83 : vector<64x128xi1>
    %85 = arith.select %84, %79, %77 : vector<64x128xi1>, vector<64x128xf32>
    %c2_39 = arith.constant 2 : index
    %c8_40 = arith.constant 8 : index
    %c0_41 = arith.constant 0 : index
    %86 = vector.load %arg11[%c2_39, %c8_40, %c0_41] : memref<10x24x128xf32, #tpu.memory_space<vmem>>, vector<8x8x128xf32>
    %87 = vector.shape_cast %86 : vector<8x8x128xf32> to vector<64x128xf32>
    %c56_i32_42 = arith.constant 56 : i32
    %88 = vector.broadcast %c56_i32_42 : i32 to vector<64x128xi32>
    %89 = arith.cmpi sge, %28, %88 : vector<64x128xi32>
    %c64_i32 = arith.constant 64 : i32
    %90 = vector.broadcast %c64_i32 : i32 to vector<64x128xi32>
    %91 = arith.cmpi slt, %28, %90 : vector<64x128xi32>
    %92 = arith.andi %89, %91 : vector<64x128xi1>
    %93 = arith.select %92, %87, %85 : vector<64x128xi1>, vector<64x128xf32>
    %c2_43 = arith.constant 2 : index
    %c9_44 = arith.constant 9 : index
    %c0_45 = arith.constant 0 : index
    %94 = vector.load %arg11[%c2_43, %c9_44, %c0_45] : memref<10x24x128xf32, #tpu.memory_space<vmem>>, vector<8x8x128xf32>
    %95 = vector.shape_cast %94 : vector<8x8x128xf32> to vector<64x128xf32>
    %c64_i32_46 = arith.constant 64 : i32
    %96 = vector.broadcast %c64_i32_46 : i32 to vector<64x128xi32>
    %97 = arith.cmpi sge, %28, %96 : vector<64x128xi32>
    %c72_i32 = arith.constant 72 : i32
    %98 = vector.broadcast %c72_i32 : i32 to vector<64x128xi32>
    %99 = arith.cmpi slt, %28, %98 : vector<64x128xi32>
    %100 = arith.andi %97, %99 : vector<64x128xi1>
    %101 = arith.select %100, %95, %93 : vector<64x128xi1>, vector<64x128xf32>
    %102 = arith.truncf %101 : vector<64x128xf32> to vector<64x128xbf16>
    %c0_47 = arith.constant 0 : index
    %c0_48 = arith.constant 0 : index
    %103 = vector.load %arg5[%c0_47, %c0_48] : memref<128x128xbf16, #tpu.memory_space<vmem>>, vector<128x128xbf16>
    %cst_49 = arith.constant dense<0.000000e+00> : vector<64x128xf32>
    %104 = tpu.matmul %102, %103, %cst_49 {dimension_numbers = #tpu.dot_dimension_numbers<[1], [0], [0], [1], [0, 0, 1, 1], [], []>} : vector<64x128xbf16>, vector<128x128xbf16>, vector<64x128xf32> -> vector<64x128xf32>
    %c0_50 = arith.constant 0 : index
    %c0_51 = arith.constant 0 : index
    %105 = vector.load %arg6[%c0_50, %c0_51] : memref<1x128xf32, #tpu.memory_space<vmem>>, vector<1x128xf32>
    %106 = vector.broadcast %105 : vector<1x128xf32> to vector<64x128xf32>
    %107 = arith.mulf %104, %106 : vector<64x128xf32>
    %c0_52 = arith.constant 0 : index
    %c0_53 = arith.constant 0 : index
    %108 = vector.load %arg7[%c0_52, %c0_53] : memref<1x128xf32, #tpu.memory_space<vmem>>, vector<1x128xf32>
    %109 = vector.broadcast %108 : vector<1x128xf32> to vector<64x128xf32>
    %110 = arith.addf %107, %109 : vector<64x128xf32>
    %cst_54 = arith.constant 0.000000e+00 : f32
    %111 = vector.broadcast %cst_54 : f32 to vector<64x128xf32>
    %112 = arith.maximumf %110, %111 : vector<64x128xf32>
    %113 = vector.shape_cast %112 : vector<64x128xf32> to vector<8x8x128xf32>
    %c0_55 = arith.constant 0 : index
    %c0_56 = arith.constant 0 : index
    %114 = vector.load %arg9[%c0_55, %c0_56] : memref<1x128xf32, #tpu.memory_space<vmem>>, vector<1x128xf32>
    %115 = vector.extract_strided_slice %113 {offsets = [0, 0, 0], sizes = [4, 4, 128], strides = [1, 1, 1]} : vector<8x8x128xf32> to vector<4x4x128xf32>
    %116 = vector.shape_cast %115 : vector<4x4x128xf32> to vector<2x2x4x128xf32>
    %117 = vector.extract_strided_slice %116 {offsets = [0, 0, 0, 0], sizes = [2, 1, 4, 128], strides = [1, 1, 1, 1]} : vector<2x2x4x128xf32> to vector<2x1x4x128xf32>
    %118 = vector.shape_cast %117 : vector<2x1x4x128xf32> to vector<2x4x128xf32>
    %119 = vector.extract_strided_slice %116 {offsets = [0, 1, 0, 0], sizes = [2, 1, 4, 128], strides = [1, 1, 1, 1]} : vector<2x2x4x128xf32> to vector<2x1x4x128xf32>
    %120 = vector.shape_cast %119 : vector<2x1x4x128xf32> to vector<2x4x128xf32>
    %121 = arith.maximumf %118, %120 : vector<2x4x128xf32>
    %122 = vector.extract_strided_slice %121 {offsets = [0, 0, 0], sizes = [2, 1, 128], strides = [1, 1, 1]} : vector<2x4x128xf32> to vector<2x1x128xf32>
    %123 = vector.extract_strided_slice %121 {offsets = [0, 1, 0], sizes = [2, 1, 128], strides = [1, 1, 1]} : vector<2x4x128xf32> to vector<2x1x128xf32>
    %124 = arith.maximumf %122, %123 : vector<2x1x128xf32>
    %125 = vector.extract_strided_slice %121 {offsets = [0, 2, 0], sizes = [2, 1, 128], strides = [1, 1, 1]} : vector<2x4x128xf32> to vector<2x1x128xf32>
    %126 = vector.extract_strided_slice %121 {offsets = [0, 3, 0], sizes = [2, 1, 128], strides = [1, 1, 1]} : vector<2x4x128xf32> to vector<2x1x128xf32>
    %127 = arith.maximumf %125, %126 : vector<2x1x128xf32>
    %128 = vector.extract_strided_slice %124 {offsets = [0, 0, 0], sizes = [1, 1, 128], strides = [1, 1, 1]} : vector<2x1x128xf32> to vector<1x1x128xf32>
    %129 = vector.shape_cast %128 : vector<1x1x128xf32> to vector<1x128xf32>
    %130 = vector.extract_strided_slice %124 {offsets = [1, 0, 0], sizes = [1, 1, 128], strides = [1, 1, 1]} : vector<2x1x128xf32> to vector<1x1x128xf32>
    %131 = vector.shape_cast %130 : vector<1x1x128xf32> to vector<1x128xf32>
    %132 = arith.addf %129, %131 : vector<1x128xf32>
    %133 = vector.extract_strided_slice %127 {offsets = [0, 0, 0], sizes = [1, 1, 128], strides = [1, 1, 1]} : vector<2x1x128xf32> to vector<1x1x128xf32>
    %134 = vector.shape_cast %133 : vector<1x1x128xf32> to vector<1x128xf32>
    %135 = arith.addf %132, %134 : vector<1x128xf32>
    %136 = vector.extract_strided_slice %127 {offsets = [1, 0, 0], sizes = [1, 1, 128], strides = [1, 1, 1]} : vector<2x1x128xf32> to vector<1x1x128xf32>
    %137 = vector.shape_cast %136 : vector<1x1x128xf32> to vector<1x128xf32>
    %138 = arith.addf %135, %137 : vector<1x128xf32>
    %cst_57 = arith.constant 2.500000e-01 : f32
    %139 = vector.broadcast %cst_57 : f32 to vector<1x128xf32>
    %140 = arith.mulf %139, %138 : vector<1x128xf32>
    %141 = arith.truncf %140 : vector<1x128xf32> to vector<1x128xbf16>
    %c0_58 = arith.constant 0 : index
    %c0_59 = arith.constant 0 : index
    %c0_60 = arith.constant 0 : index
    %142 = vector.load %arg8[%c0_58, %c0_59, %c0_60] : memref<4x128x128xbf16, #tpu.memory_space<vmem>>, vector<1x128x128xbf16>
    %143 = vector.shape_cast %142 : vector<1x128x128xbf16> to vector<128x128xbf16>
    %cst_61 = arith.constant dense<0.000000e+00> : vector<1x128xf32>
    %144 = tpu.matmul %141, %143, %cst_61 {dimension_numbers = #tpu.dot_dimension_numbers<[1], [0], [0], [1], [0, 0, 1, 1], [], []>} : vector<1x128xbf16>, vector<128x128xbf16>, vector<1x128xf32> -> vector<1x128xf32>
    %145 = arith.addf %114, %144 : vector<1x128xf32>
    %146 = vector.extract_strided_slice %113 {offsets = [0, 4, 0], sizes = [4, 4, 128], strides = [1, 1, 1]} : vector<8x8x128xf32> to vector<4x4x128xf32>
    %147 = vector.shape_cast %146 : vector<4x4x128xf32> to vector<2x2x4x128xf32>
    %148 = vector.extract_strided_slice %147 {offsets = [0, 0, 0, 0], sizes = [2, 1, 4, 128], strides = [1, 1, 1, 1]} : vector<2x2x4x128xf32> to vector<2x1x4x128xf32>
    %149 = vector.shape_cast %148 : vector<2x1x4x128xf32> to vector<2x4x128xf32>
    %150 = vector.extract_strided_slice %147 {offsets = [0, 1, 0, 0], sizes = [2, 1, 4, 128], strides = [1, 1, 1, 1]} : vector<2x2x4x128xf32> to vector<2x1x4x128xf32>
    %151 = vector.shape_cast %150 : vector<2x1x4x128xf32> to vector<2x4x128xf32>
    %152 = arith.maximumf %149, %151 : vector<2x4x128xf32>
    %153 = vector.extract_strided_slice %152 {offsets = [0, 0, 0], sizes = [2, 1, 128], strides = [1, 1, 1]} : vector<2x4x128xf32> to vector<2x1x128xf32>
    %154 = vector.extract_strided_slice %152 {offsets = [0, 1, 0], sizes = [2, 1, 128], strides = [1, 1, 1]} : vector<2x4x128xf32> to vector<2x1x128xf32>
    %155 = arith.maximumf %153, %154 : vector<2x1x128xf32>
    %156 = vector.extract_strided_slice %152 {offsets = [0, 2, 0], sizes = [2, 1, 128], strides = [1, 1, 1]} : vector<2x4x128xf32> to vector<2x1x128xf32>
    %157 = vector.extract_strided_slice %152 {offsets = [0, 3, 0], sizes = [2, 1, 128], strides = [1, 1, 1]} : vector<2x4x128xf32> to vector<2x1x128xf32>
    %158 = arith.maximumf %156, %157 : vector<2x1x128xf32>
    %159 = vector.extract_strided_slice %155 {offsets = [0, 0, 0], sizes = [1, 1, 128], strides = [1, 1, 1]} : vector<2x1x128xf32> to vector<1x1x128xf32>
    %160 = vector.shape_cast %159 : vector<1x1x128xf32> to vector<1x128xf32>
    %161 = vector.extract_strided_slice %155 {offsets = [1, 0, 0], sizes = [1, 1, 128], strides = [1, 1, 1]} : vector<2x1x128xf32> to vector<1x1x128xf32>
    %162 = vector.shape_cast %161 : vector<1x1x128xf32> to vector<1x128xf32>
    %163 = arith.addf %160, %162 : vector<1x128xf32>
    %164 = vector.extract_strided_slice %158 {offsets = [0, 0, 0], sizes = [1, 1, 128], strides = [1, 1, 1]} : vector<2x1x128xf32> to vector<1x1x128xf32>
    %165 = vector.shape_cast %164 : vector<1x1x128xf32> to vector<1x128xf32>
    %166 = arith.addf %163, %165 : vector<1x128xf32>
    %167 = vector.extract_strided_slice %158 {offsets = [1, 0, 0], sizes = [1, 1, 128], strides = [1, 1, 1]} : vector<2x1x128xf32> to vector<1x1x128xf32>
    %168 = vector.shape_cast %167 : vector<1x1x128xf32> to vector<1x128xf32>
    %169 = arith.addf %166, %168 : vector<1x128xf32>
    %cst_62 = arith.constant 2.500000e-01 : f32
    %170 = vector.broadcast %cst_62 : f32 to vector<1x128xf32>
    %171 = arith.mulf %170, %169 : vector<1x128xf32>
    %172 = arith.truncf %171 : vector<1x128xf32> to vector<1x128xbf16>
    %c1_63 = arith.constant 1 : index
    %c0_64 = arith.constant 0 : index
    %c0_65 = arith.constant 0 : index
    %173 = vector.load %arg8[%c1_63, %c0_64, %c0_65] : memref<4x128x128xbf16, #tpu.memory_space<vmem>>, vector<1x128x128xbf16>
    %174 = vector.shape_cast %173 : vector<1x128x128xbf16> to vector<128x128xbf16>
    %cst_66 = arith.constant dense<0.000000e+00> : vector<1x128xf32>
    %175 = tpu.matmul %172, %174, %cst_66 {dimension_numbers = #tpu.dot_dimension_numbers<[1], [0], [0], [1], [0, 0, 1, 1], [], []>} : vector<1x128xbf16>, vector<128x128xbf16>, vector<1x128xf32> -> vector<1x128xf32>
    %176 = arith.addf %145, %175 : vector<1x128xf32>
    %177 = vector.extract_strided_slice %113 {offsets = [4, 0, 0], sizes = [4, 4, 128], strides = [1, 1, 1]} : vector<8x8x128xf32> to vector<4x4x128xf32>
    %178 = vector.shape_cast %177 : vector<4x4x128xf32> to vector<2x2x4x128xf32>
    %179 = vector.extract_strided_slice %178 {offsets = [0, 0, 0, 0], sizes = [2, 1, 4, 128], strides = [1, 1, 1, 1]} : vector<2x2x4x128xf32> to vector<2x1x4x128xf32>
    %180 = vector.shape_cast %179 : vector<2x1x4x128xf32> to vector<2x4x128xf32>
    %181 = vector.extract_strided_slice %178 {offsets = [0, 1, 0, 0], sizes = [2, 1, 4, 128], strides = [1, 1, 1, 1]} : vector<2x2x4x128xf32> to vector<2x1x4x128xf32>
    %182 = vector.shape_cast %181 : vector<2x1x4x128xf32> to vector<2x4x128xf32>
    %183 = arith.maximumf %180, %182 : vector<2x4x128xf32>
    %184 = vector.extract_strided_slice %183 {offsets = [0, 0, 0], sizes = [2, 1, 128], strides = [1, 1, 1]} : vector<2x4x128xf32> to vector<2x1x128xf32>
    %185 = vector.extract_strided_slice %183 {offsets = [0, 1, 0], sizes = [2, 1, 128], strides = [1, 1, 1]} : vector<2x4x128xf32> to vector<2x1x128xf32>
    %186 = arith.maximumf %184, %185 : vector<2x1x128xf32>
    %187 = vector.extract_strided_slice %183 {offsets = [0, 2, 0], sizes = [2, 1, 128], strides = [1, 1, 1]} : vector<2x4x128xf32> to vector<2x1x128xf32>
    %188 = vector.extract_strided_slice %183 {offsets = [0, 3, 0], sizes = [2, 1, 128], strides = [1, 1, 1]} : vector<2x4x128xf32> to vector<2x1x128xf32>
    %189 = arith.maximumf %187, %188 : vector<2x1x128xf32>
    %190 = vector.extract_strided_slice %186 {offsets = [0, 0, 0], sizes = [1, 1, 128], strides = [1, 1, 1]} : vector<2x1x128xf32> to vector<1x1x128xf32>
    %191 = vector.shape_cast %190 : vector<1x1x128xf32> to vector<1x128xf32>
    %192 = vector.extract_strided_slice %186 {offsets = [1, 0, 0], sizes = [1, 1, 128], strides = [1, 1, 1]} : vector<2x1x128xf32> to vector<1x1x128xf32>
    %193 = vector.shape_cast %192 : vector<1x1x128xf32> to vector<1x128xf32>
    %194 = arith.addf %191, %193 : vector<1x128xf32>
    %195 = vector.extract_strided_slice %189 {offsets = [0, 0, 0], sizes = [1, 1, 128], strides = [1, 1, 1]} : vector<2x1x128xf32> to vector<1x1x128xf32>
    %196 = vector.shape_cast %195 : vector<1x1x128xf32> to vector<1x128xf32>
    %197 = arith.addf %194, %196 : vector<1x128xf32>
    %198 = vector.extract_strided_slice %189 {offsets = [1, 0, 0], sizes = [1, 1, 128], strides = [1, 1, 1]} : vector<2x1x128xf32> to vector<1x1x128xf32>
    %199 = vector.shape_cast %198 : vector<1x1x128xf32> to vector<1x128xf32>
    %200 = arith.addf %197, %199 : vector<1x128xf32>
    %cst_67 = arith.constant 2.500000e-01 : f32
    %201 = vector.broadcast %cst_67 : f32 to vector<1x128xf32>
    %202 = arith.mulf %201, %200 : vector<1x128xf32>
    %203 = arith.truncf %202 : vector<1x128xf32> to vector<1x128xbf16>
    %c2_68 = arith.constant 2 : index
    %c0_69 = arith.constant 0 : index
    %c0_70 = arith.constant 0 : index
    %204 = vector.load %arg8[%c2_68, %c0_69, %c0_70] : memref<4x128x128xbf16, #tpu.memory_space<vmem>>, vector<1x128x128xbf16>
    %205 = vector.shape_cast %204 : vector<1x128x128xbf16> to vector<128x128xbf16>
    %cst_71 = arith.constant dense<0.000000e+00> : vector<1x128xf32>
    %206 = tpu.matmul %203, %205, %cst_71 {dimension_numbers = #tpu.dot_dimension_numbers<[1], [0], [0], [1], [0, 0, 1, 1], [], []>} : vector<1x128xbf16>, vector<128x128xbf16>, vector<1x128xf32> -> vector<1x128xf32>
    %207 = arith.addf %176, %206 : vector<1x128xf32>
    %208 = vector.extract_strided_slice %113 {offsets = [4, 4, 0], sizes = [4, 4, 128], strides = [1, 1, 1]} : vector<8x8x128xf32> to vector<4x4x128xf32>
    %209 = vector.shape_cast %208 : vector<4x4x128xf32> to vector<2x2x4x128xf32>
    %210 = vector.extract_strided_slice %209 {offsets = [0, 0, 0, 0], sizes = [2, 1, 4, 128], strides = [1, 1, 1, 1]} : vector<2x2x4x128xf32> to vector<2x1x4x128xf32>
    %211 = vector.shape_cast %210 : vector<2x1x4x128xf32> to vector<2x4x128xf32>
    %212 = vector.extract_strided_slice %209 {offsets = [0, 1, 0, 0], sizes = [2, 1, 4, 128], strides = [1, 1, 1, 1]} : vector<2x2x4x128xf32> to vector<2x1x4x128xf32>
    %213 = vector.shape_cast %212 : vector<2x1x4x128xf32> to vector<2x4x128xf32>
    %214 = arith.maximumf %211, %213 : vector<2x4x128xf32>
    %215 = vector.extract_strided_slice %214 {offsets = [0, 0, 0], sizes = [2, 1, 128], strides = [1, 1, 1]} : vector<2x4x128xf32> to vector<2x1x128xf32>
    %216 = vector.extract_strided_slice %214 {offsets = [0, 1, 0], sizes = [2, 1, 128], strides = [1, 1, 1]} : vector<2x4x128xf32> to vector<2x1x128xf32>
    %217 = arith.maximumf %215, %216 : vector<2x1x128xf32>
    %218 = vector.extract_strided_slice %214 {offsets = [0, 2, 0], sizes = [2, 1, 128], strides = [1, 1, 1]} : vector<2x4x128xf32> to vector<2x1x128xf32>
    %219 = vector.extract_strided_slice %214 {offsets = [0, 3, 0], sizes = [2, 1, 128], strides = [1, 1, 1]} : vector<2x4x128xf32> to vector<2x1x128xf32>
    %220 = arith.maximumf %218, %219 : vector<2x1x128xf32>
    %221 = vector.extract_strided_slice %217 {offsets = [0, 0, 0], sizes = [1, 1, 128], strides = [1, 1, 1]} : vector<2x1x128xf32> to vector<1x1x128xf32>
    %222 = vector.shape_cast %221 : vector<1x1x128xf32> to vector<1x128xf32>
    %223 = vector.extract_strided_slice %217 {offsets = [1, 0, 0], sizes = [1, 1, 128], strides = [1, 1, 1]} : vector<2x1x128xf32> to vector<1x1x128xf32>
    %224 = vector.shape_cast %223 : vector<1x1x128xf32> to vector<1x128xf32>
    %225 = arith.addf %222, %224 : vector<1x128xf32>
    %226 = vector.extract_strided_slice %220 {offsets = [0, 0, 0], sizes = [1, 1, 128], strides = [1, 1, 1]} : vector<2x1x128xf32> to vector<1x1x128xf32>
    %227 = vector.shape_cast %226 : vector<1x1x128xf32> to vector<1x128xf32>
    %228 = arith.addf %225, %227 : vector<1x128xf32>
    %229 = vector.extract_strided_slice %220 {offsets = [1, 0, 0], sizes = [1, 1, 128], strides = [1, 1, 1]} : vector<2x1x128xf32> to vector<1x1x128xf32>
    %230 = vector.shape_cast %229 : vector<1x1x128xf32> to vector<1x128xf32>
    %231 = arith.addf %228, %230 : vector<1x128xf32>
    %cst_72 = arith.constant 2.500000e-01 : f32
    %232 = vector.broadcast %cst_72 : f32 to vector<1x128xf32>
    %233 = arith.mulf %232, %231 : vector<1x128xf32>
    %234 = arith.truncf %233 : vector<1x128xf32> to vector<1x128xbf16>
    %c3 = arith.constant 3 : index
    %c0_73 = arith.constant 0 : index
    %c0_74 = arith.constant 0 : index
    %235 = vector.load %arg8[%c3, %c0_73, %c0_74] : memref<4x128x128xbf16, #tpu.memory_space<vmem>>, vector<1x128x128xbf16>
    %236 = vector.shape_cast %235 : vector<1x128x128xbf16> to vector<128x128xbf16>
    %cst_75 = arith.constant dense<0.000000e+00> : vector<1x128xf32>
    %237 = tpu.matmul %234, %236, %cst_75 {dimension_numbers = #tpu.dot_dimension_numbers<[1], [0], [0], [1], [0, 0, 1, 1], [], []>} : vector<1x128xbf16>, vector<128x128xbf16>, vector<1x128xf32> -> vector<1x128xf32>
    %238 = arith.addf %207, %237 : vector<1x128xf32>
    %c0_76 = arith.constant 0 : index
    %c0_77 = arith.constant 0 : index
    %c0_78 = arith.constant 0 : index
    %239 = vector.load %arg10[%c0_76, %c0_77, %c0_78] : memref<1x1x128xf32, #tpu.memory_space<vmem>>, vector<1x1x128xf32>
    %240 = vector.shape_cast %239 : vector<1x1x128xf32> to vector<1x128xf32>
    %241 = vector.shape_cast %238 : vector<1x128xf32> to vector<1x1x128xf32>
    tpu.vector_store %arg10[%c0_76, %c0_77, %c0_78], %241 {strides = array<i32>} : memref<1x1x128xf32, #tpu.memory_space<vmem>>, vector<1x1x128xf32>,
    return
  }
  func.func @transform_0(%arg0: i32) -> (i32, i32, i32) {
    %c0_i32 = arith.constant 0 : i32
    %c0_i32_0 = arith.constant 0 : i32
    %c0_i32_1 = arith.constant 0 : i32
    return %arg0, %c0_i32, %c0_i32_0 : i32, i32, i32
  }
  func.func @transform_1(%arg0: i32) -> (i32, i32) {
    %c0_i32 = arith.constant 0 : i32
    %c0_i32_0 = arith.constant 0 : i32
    %c0_i32_1 = arith.constant 0 : i32
    return %c0_i32, %c0_i32_0 : i32, i32
  }
  func.func @transform_2(%arg0: i32) -> (i32, i32) {
    %c0_i32 = arith.constant 0 : i32
    %c0_i32_0 = arith.constant 0 : i32
    %c0_i32_1 = arith.constant 0 : i32
    return %c0_i32, %c0_i32_0 : i32, i32
  }
  func.func @transform_3(%arg0: i32) -> (i32, i32) {
    %c0_i32 = arith.constant 0 : i32
    %c0_i32_0 = arith.constant 0 : i32
    %c0_i32_1 = arith.constant 0 : i32
    return %c0_i32, %c0_i32_0 : i32, i32
  }
  func.func @transform_4(%arg0: i32) -> (i32, i32) {
    %c0_i32 = arith.constant 0 : i32
    %c0_i32_0 = arith.constant 0 : i32
    %c0_i32_1 = arith.constant 0 : i32
    return %c0_i32, %c0_i32_0 : i32, i32
  }
  func.func @transform_5(%arg0: i32) -> (i32, i32) {
    %c0_i32 = arith.constant 0 : i32
    %c0_i32_0 = arith.constant 0 : i32
    %c0_i32_1 = arith.constant 0 : i32
    return %c0_i32, %c0_i32_0 : i32, i32
  }
  func.func @transform_6(%arg0: i32) -> (i32, i32) {
    %c0_i32 = arith.constant 0 : i32
    %c0_i32_0 = arith.constant 0 : i32
    %c0_i32_1 = arith.constant 0 : i32
    return %c0_i32, %c0_i32_0 : i32, i32
  }
  func.func @transform_7(%arg0: i32) -> (i32, i32, i32) {
    %c0_i32 = arith.constant 0 : i32
    %c0_i32_0 = arith.constant 0 : i32
    %c0_i32_1 = arith.constant 0 : i32
    %c0_i32_2 = arith.constant 0 : i32
    return %c0_i32, %c0_i32_0, %c0_i32_1 : i32, i32, i32
  }
  func.func @transform_8(%arg0: i32) -> (i32, i32) {
    %c0_i32 = arith.constant 0 : i32
    %c0_i32_0 = arith.constant 0 : i32
    %c0_i32_1 = arith.constant 0 : i32
    return %c0_i32, %c0_i32_0 : i32, i32
  }
  func.func @transform_9(%arg0: i32) -> (i32, i32, i32) {
    %c0_i32 = arith.constant 0 : i32
    %c0_i32_0 = arith.constant 0 : i32
    %c0_i32_1 = arith.constant 0 : i32
    return %arg0, %c0_i32, %c0_i32_0 : i32, i32, i32
  }
}

</mosaic_0001>

<bundles_post_ra>
// kernel: bottleneck_vgg_forward.1
= control target key start
LH: loop header
LB: loop body
LE: loop exit
PB: predicated region body
PF: predicated region fallthrough
CT: control target
= control target key end

     0   :  { %14 = vsyncpa [#allocation4], 0  ;;  %s3027_s0 = inlined_call_operand.vmem [shape: bf16[2,256,128], index: 0, kind: input, shape index: {}]   ;;  %s3028_s1 = inlined_call_operand.vmem [shape: bf16[128,128], index: 1, kind: input, shape index: {}]   ;;  %s3029_s2 = inlined_call_operand.vmem [shape: f32[1,128], index: 2, kind: input, shape index: {}]   ;;  %s3030_s3 = inlined_call_operand.vmem [shape: f32[1,128], index: 3, kind: input, shape index: {}]   ;;  %s3031_s4 = inlined_call_operand.vmem [shape: bf16[128,128], index: 4, kind: input, shape index: {}]   ;;  %s3032_s5 = inlined_call_operand.vmem [shape: f32[1,128], index: 5, kind: input, shape index: {}]   ;;  %s3033_s6 = inlined_call_operand.vmem [shape: f32[1,128], index: 6, kind: input, shape index: {}]   ;;  %s3034_s7 = inlined_call_operand.vmem [shape: bf16[4,128,128], index: 7, kind: input, shape index: {}]   ;;  %s3035_s8 = inlined_call_operand.vmem [shape: f32[1,128], index: 8, kind: input, shape index: {}]   ;;  %s3036_s9 = inlined_call_operand.hbm [shape: f32[2,1,128], index: 9, kind: output, shape index: {}]  }
   0x1   :  { %16 = vsyncpa [#allocation4 + $0x1], 0  ;;  %s2313_s30 = smov 0   ;;  %s2315_s10 = smov 0  }
   0x2   :  { %s2317_s11 = smov 0   ;;  %s2319_s12 = smov 0  }
   0x3 LB: > { %s2334_s13 = sadd.s32 4294967295, %s2258_s12   ;;  %s1743_s14 = sadd.s32 4294967294, %s2258_s12   ;;  %s2258_s12 = sphi %s2319_s12, %s3058_s12   ;;  %s2254_s11 = sphi %s2317_s11, %s3057_s11   ;;  %s2250_s10 = sphi %s2315_s10, %s3056_s10   ;;  %s2246_s30 = sphi %s2313_s30, %s3055_s30  }
   0x4   : > { %s2338_s15 = sadd.s32 1, %s2258_s12   ;;  %s223_s16 = sadd.s32 1, %s2254_s11 }
   0x5   : > { %s220_s17 = ssub.s32 %s2258_s12, %s2338_s15  ;;  %p233_p0 = scmp.ne.s32.totalorder %s2254_s11, %s2250_s10 }
   0x6   : > { %p221_p1 = scmp.eq.s32.totalorder %s220_s17, 0  ;;  %p234_p2 = scmp.eq.s32.totalorder %s2334_s13, 1 }
   0x7   : > { %p239_p3 = scmp.ne.s32.totalorder %s2250_s10, %s2246_s30  ;;  %p240_p4 = scmp.eq.s32.totalorder %s1743_s14, 1 }
   0x8   : > { %s2349_s18 = scalar_select %p221_p1, %s2254_s11, %s223_s16  }
   0x9   : > { %p2351_p5 = por %p234_p2, %p233_p0  ;;  %p2355_p6 = por %p240_p4, %p239_p3 }
   0xa   : > { %p1746_p7 = scmp.ge.s32.totalorder %s2258_s12, 1  ;;  %p290_p8 = scmp.lt.s32.totalorder %s2258_s12, 3 }
   0xc   : > { %p291_p9 = pnand %p1746_p7, %p290_p8 }
   0xd   : > { %p325_p10 = scmp.lt.s32.totalorder (!%p291_p9), %s2334_s13, 1  ;;  %s323_s24 = sand.u32 (!%p291_p9), 1, %s2250_s10  }
   0xe   : > { %294 = sbr.rel (%p291_p9) target bundleno = 792 (0x318), region = 56  ;;  %s324_s26 = scalar_lea.vmem (!%p291_p9), [#allocation3], %s323_s24 }
   0xf   : > { %s1688_s27 = sshll.u32 (!%p291_p9), %s324_s26, 4  ;;  %s2262_s21 = smov (!%p291_p9), [#allocation3]   ;;  %s2988_s27 = int_to_ptr.vmem [resolvable:$true] %s1688_s27 }
  0x10   : > { %s2198_s17 = scalar_lea.vmem (!%p291_p9), %s2988_s27, 16  ;;  %s2202_s22 = sshll.u32 (!%p291_p9), %s2262_s21, 4  ;;  %s2203_s22 = int_to_ptr.vmem [resolvable:$false] %s2202_s22 }
  0x11   : > { %p2199_p11 = scmp.ne.s32.totalorder (!%p291_p9), %s2988_s27, %s2198_s17  ;;  %p2205_p0 = scmp.lt.s32.totalorder (!%p291_p9), %s2988_s27, %s2203_s22 }
  0x13   : > { %v2134_v0 = vld [vmem:[%s3028_s1 + $0x38] sm:$0xff]   ;;  %v2135_v1 = vld [vmem:[%s3028_s1 + $0x30] sm:$0xff]   ;;  %s326_s25 = scalar_select %p325_p10, %s2334_s13, 1  ;;  %v2136_v2 = vld [vmem:[%s3028_s1 + $0x28] sm:$0xff]   ;;  %v2260_v26 = vmov 0.0   ;;  %v857_v51 = vlaneseq }
  0x14   : > { %1941 = vmatprep.subr.bf16.mxu0 %v2134_v0  ;;  %v2137_v3 = vld [vmem:[%s3028_s1 + $0x20] sm:$0xff]   ;;  %v2138_v5 = vld [vmem:[%s3028_s1 + $0x18] sm:$0xff]   ;;  %v2139_v6 = vld [vmem:[%s3028_s1 + $0x10] sm:$0xff]   ;;  %818 = vst [vmem:[#allocation2] sm:$0xff] %v2260_v26  ;;  %p2200_p12 = pnand %p2199_p11, %p2351_p5 }
  0x15   : > { %1942 = vmatpush3.bf16.msra.mxu0 %v2134_v0  ;;  %s1868_s28 = sshll.u32 %s326_s25, 7  ;;  %v2140_v7 = vld [vmem:[%s3028_s1 + $0x8] sm:$0xff]   ;;  %v2141_v8 = vld [vmem:[%s3028_s1] sm:$0xff]   ;;  %v2158_v24 = vld [vmem:[%s3031_s4 + $0x38] sm:$0xff]   ;;  %819 = vst [vmem:[#allocation2 + $0x8] sm:$0xff] %v2260_v26  ;;  %v2478_v54 = vand.u32 127, %v857_v51 }
  0x16   : > { %1943 = vmatprep.subr.bf16.mxu0 %v2135_v1  ;;  %s2375_s16 = scalar_lea.vmem %s3027_s0, %s1868_s28  ;;  %1989 = vmatprep.subr.bf16.mxu1 %v2158_v24  ;;  %v2159_v25 = vld [vmem:[%s3031_s4 + $0x30] sm:$0xff]   ;;  %820 = vst [vmem:[#allocation2 + $0x10] sm:$0xff] %v2260_v26  ;;  %821 = vst [vmem:[#allocation2 + $0x18] sm:$0xff] %v2260_v26  ;;  %v2160_v27 = vld [vmem:[%s3031_s4 + $0x28] sm:$0xff]   ;;  %s1865_s25 = sshll.u32 %s2334_s13, 4 }
  0x17   : > { %v2142_v4 = vld [vmem:[%s2375_s16] sm:$0xff]   ;;  %v2143_v9 = vld [vmem:[%s2375_s16 + $0x8] sm:$0xff]   ;;  %v2144_v10 = vld [vmem:[%s2375_s16 + $0x10] sm:$0xff]   ;;  %1990 = vmatpush3.bf16.msra.mxu1 %v2158_v24  ;;  %823 = vst [vmem:[#allocation2 + $0x28] sm:$0xff] %v2260_v26  ;;  %vm868_vm0 = vcmp.lt.s32.totalorder %v2478_v54, 8  ;;  %vm886_vm1 = vcmp.ge.s32.totalorder %v2478_v54, 8  ;;  %s2986_s14 = scalar_lea.hbm %s3036_s9, %s1865_s25  ;;  %p2201_p13 = pneg %p2200_p12 }
  0x18   : > { %1957 = vmatprep.mubr.bf16.mxu0 %v2142_v4  ;;  %v2145_v11 = vld [vmem:[%s2375_s16 + $0x18] sm:$0xff]   ;;  %v2146_v12 = vld [vmem:[%s2375_s16 + $0x20] sm:$0xff]   ;;  %v2147_v13 = vld [vmem:[%s2375_s16 + $0x28] sm:$0xff]   ;;  %1991 = vmatprep.subr.bf16.mxu1 %v2159_v25  ;;  %824 = vst [vmem:[#allocation2 + $0x30] sm:$0xff] %v2260_v26  ;;  %vm887_vm2 = vcmp.lt.s32.totalorder %v2478_v54, 16  ;;  %vm905_vm4 = vcmp.ge.s32.totalorder %v2478_v54, 16 }
  0x19   : > { %1944 = vmatpush3.bf16.msra.mxu0 %v2135_v1  ;;  %v2148_v14 = vld [vmem:[%s2375_s16 + $0x30] sm:$0xff]   ;;  %v2149_v15 = vld [vmem:[%s2375_s16 + $0x38] sm:$0xff]   ;;  %v2150_v16 = vld [vmem:[%s2375_s16 + $0x40] sm:$0xff]   ;;  %826 = vst [vmem:[#allocation2 + $0x40] sm:$0xff] %v2260_v26  ;;  %vm906_vm5 = vcmp.lt.s32.totalorder %v2478_v54, 24  ;;  %vm924_vm7 = vcmp.ge.s32.totalorder %v2478_v54, 24 }
  0x1a   : > { %1945 = vmatprep.subr.bf16.mxu0 %v2136_v2  ;;  %v2151_v17 = vld [vmem:[%s2375_s16 + $0x48] sm:$0xff]   ;;  %v2152_v18 = vld [vmem:[%s2375_s16 + $0x50] sm:$0xff]   ;;  %v2153_v19 = vld [vmem:[%s2375_s16 + $0x58] sm:$0xff]   ;;  %827 = vst [vmem:[#allocation2 + $0x48] sm:$0xff] %v2260_v26  ;;  %vm925_vm8 = vcmp.lt.s32.totalorder %v2478_v54, 32  ;;  %vm943_vm9 = vcmp.ge.s32.totalorder %v2478_v54, 32 }
  0x1b   : > { %v2154_v20 = vld [vmem:[%s2375_s16 + $0x60] sm:$0xff]   ;;  %v2155_v21 = vld [vmem:[%s2375_s16 + $0x68] sm:$0xff]   ;;  %v2156_v22 = vld [vmem:[%s2375_s16 + $0x70] sm:$0xff]   ;;  %829 = vst [vmem:[#allocation2 + $0x58] sm:$0xff] %v2260_v26  ;;  %1992 = vmatpush3.bf16.msra.mxu1 %v2159_v25  ;;  %vm944_vm10 = vcmp.lt.s32.totalorder %v2478_v54, 40  ;;  %vm962_vm11 = vcmp.ge.s32.totalorder %v2478_v54, 40 }
  0x1c   : > { %v2157_v23 = vld [vmem:[%s2375_s16 + $0x78] sm:$0xff]   ;;  %830 = vst [vmem:[#allocation2 + $0x60] sm:$0xff] %v2260_v26  ;;  %832 = vst [vmem:[#allocation2 + $0x70] sm:$0xff] %v2260_v26  ;;  %1993 = vmatprep.subr.bf16.mxu1 %v2160_v27  ;;  %v2161_v28 = vld [vmem:[%s3031_s4 + $0x20] sm:$0xff]   ;;  %vm963_vm12 = vcmp.lt.s32.totalorder %v2478_v54, 48  ;;  %vm982_vm13 = vcmp.ge.s32.totalorder %v2478_v54, 48 }
  0x1d   : > { %1946 = vmatpush3.bf16.msra.mxu0 %v2136_v2  ;;  %833 = vst [vmem:[#allocation2 + $0x78] sm:$0xff] %v2260_v26  ;;  %835 = vst [vmem:[#allocation2 + $0x88] sm:$0xff] %v2260_v26  ;;  %v2162_v29 = vld [vmem:[%s3031_s4 + $0x18] sm:$0xff]   ;;  %v2163_v30 = vld [vmem:[%s3031_s4 + $0x10] sm:$0xff]   ;;  %vm983_vm14 = vcmp.lt.s32.totalorder %v2478_v54, 56  ;;  %vm1001_vm15 = vcmp.ge.s32.totalorder %v2478_v54, 56 }
  0x1e   : > { %1947 = vmatprep.subr.bf16.mxu0 %v2137_v3  ;;  %836 = vst [vmem:[#allocation2 + $0x90] sm:$0xff] %v2260_v26  ;;  %838 = vst [vmem:[#allocation2 + $0xa0] sm:$0xff] %v2260_v26  ;;  %v2164_v31 = vld [vmem:[%s3031_s4 + $0x8] sm:$0xff]   ;;  %v2165_v32 = vld [vmem:[%s3031_s4] sm:$0xff]   ;;  %s1676_s13 = scalar_lea.sflag [#allocation4], %s323_s24  ;;  %s2204_s16 = scalar_lea.vmem %s2203_s22, 32 }
  0x1f   : > { %839 = vst [vmem:[#allocation2 + $0xa8] sm:$0xff] %v2260_v26  ;;  %841 = vst [vmem:[#allocation2 + $0xb8] sm:$0xff] %v2260_v26  ;;  %1994 = vmatpush3.bf16.msra.mxu1 %v2160_v27  ;;  %v2166_v33 = vld [vmem:[%s3034_s7 + $0x78] sm:$0xff]   ;;  %v2167_v34 = vld [vmem:[%s3034_s7 + $0x70] sm:$0xff]   ;;  %p2206_p1 = scmp.lt.s32.totalorder %s2204_s16, %s2198_s17 }
  0x20   : > { %842 = vst [vmem:[#allocation2 + $0xc0] sm:$0xff] %v2260_v26  ;;  %844 = vst [vmem:[#allocation2 + $0xd0] sm:$0xff] %v2260_v26  ;;  %1995 = vmatprep.subr.bf16.mxu1 %v2161_v28  ;;  %v2168_v35 = vld [vmem:[%s3034_s7 + $0x68] sm:$0xff]   ;;  %v2169_v36 = vld [vmem:[%s3034_s7 + $0x60] sm:$0xff]  }
  0x21   : > { %1948 = vmatpush3.bf16.msra.mxu0 %v2137_v3  ;;  %845 = vst [vmem:[#allocation2 + $0xd8] sm:$0xff] %v2260_v26  ;;  %846 = vst [vmem:[#allocation2 + $0xe0] sm:$0xff] %v2260_v26  ;;  %v2171_v37 = vld [vmem:[%s3034_s7 + $0x58] sm:$0xff]   ;;  %v859_v57 = vld [vmem:[#allocation2 + $0x7] sm:$0xff]  ;;  %p2207_p2 = por %p2206_p1, %p2205_p0 }
  0x22   : > { %1949 = vmatprep.subr.bf16.mxu0 %v2138_v5  ;;  %847 = vst [vmem:[#allocation2 + $0xe8] sm:$0xff] %v2260_v26  ;;  %v2488_v58 = vld [vmem:[%s3029_s2] ss:$0 sm:$0xff]  ;;  %v870_v60 = vsel %vm868_vm0, %v859_v57, 0.0  ;;  %vm2492_vm3 = vmand %vm886_vm1, %vm887_vm2 }
  0x23   : > { %1996 = vmatpush3.bf16.msra.mxu1 %v2161_v28  ;;  %v2503_v1 = vld [vmem:[%s3030_s3] ss:$0 sm:$0xff]  ;;  %vm2515_vm6 = vmand %vm905_vm4, %vm906_vm5  ;;  %vm1002_vm5 = vcmp.lt.s32.totalorder %v2478_v54, 64  ;;  %p2208_p3 = pnand %p2207_p2, %p2201_p13 }
  0x24   : > { %1997 = vmatprep.subr.bf16.mxu1 %v2162_v29  ;;  %vm2640_vm1 = vmand %vm924_vm7, %vm925_vm8  ;;  %vm1020_vm7 = vcmp.ge.s32.totalorder %v2478_v54, 64 }
  0x25   : > { %1950 = vmatpush3.bf16.msra.mxu0 %v2138_v5  ;;  %vm2650_vm2 = vmand %vm943_vm9, %vm944_vm10  ;;  %vm1021_vm9 = vcmp.lt.s32.totalorder %v2478_v54, 72 }
  0x26   : > { %1951 = vmatprep.subr.bf16.mxu0 %v2139_v6  ;;  %vm2661_vm4 = vmand %vm962_vm11, %vm963_vm12 }
  0x27   : > { %1998 = vmatpush3.bf16.msra.mxu1 %v2162_v29  ;;  %vm2688_vm8 = vmand %vm982_vm13, %vm983_vm14 }
  0x28   : > { %1999 = vmatprep.subr.bf16.mxu1 %v2163_v30  ;;  %vm2706_vm10 = vmand %vm1001_vm15, %vm1002_vm5 }
  0x29   : > { %1952 = vmatpush3.bf16.msra.mxu0 %v2139_v6  ;;  %vm2726_vm11 = vmand %vm1020_vm7, %vm1021_vm9 }
  0x2a   : > { %1953 = vmatprep.subr.bf16.mxu0 %v2140_v7 }
  0x2b   : > { %2000 = vmatpush3.bf16.msra.mxu1 %v2163_v30 }
  0x2c   : > { %2001 = vmatprep.subr.bf16.mxu1 %v2164_v31 }
  0x2d   : > { %1954 = vmatpush3.bf16.msra.mxu0 %v2140_v7  ;;  %v889_v7 = vsel %vm2492_vm3, 0.0, %v870_v60 }
  0x2e   : > { %1955 = vmatprep.subr.bf16.mxu0 %v2141_v8 }
  0x2f   : > { %2002 = vmatpush3.bf16.msra.mxu1 %v2164_v31 }
  0x30   : > { %2003 = vmatprep.subr.bf16.mxu1 %v2165_v32 }
  0x31   : > { %1956 = vmatpush3.bf16.msra.mxu0 %v2141_v8 }
  0x32   : > { %2033 = vmatprep.subr.bf16.mxu0 %v2260_v26 }
  0x33   : > { %2004 = vmatpush3.bf16.msra.mxu1 %v2165_v32 }
  0x34   : > { %1958 = vmatmul.mubr.bf16.vlgmr.msra.gmra.mxu0 %v2143_v9  ;;  %2013 = vmatprep.subr.bf16.mxu1 %v2260_v26 }
  0x35   : > { %1961 = vmatprep.mubr.bf16.mxu0 %v2144_v10  ;;  %2034 = vmatpush3.bf16.msra.mxu0 %v2166_v33 }
  0x36   : > { %2035 = vmatprep.subr.bf16.mxu0 %v2260_v26 }
  0x39   : > { %2036 = vmatpush3.bf16.msra.mxu0 %v2167_v34 }
  0x3a   : > { %2037 = vmatprep.subr.bf16.mxu0 %v2260_v26 }
  0x3c   : > { %1962 = vmatmul.mubr.bf16.gmra.mxu0 %v2145_v11 }
  0x3d   : > { %1965 = vmatprep.mubr.bf16.mxu0 %v2146_v12  ;;  %2038 = vmatpush3.bf16.msra.mxu0 %v2168_v35  ;;  %v897_v12 = vld [vmem:[#allocation2 + $0x9] sm:$0xff] }
  0x3e   : > { %2039 = vmatprep.subr.bf16.mxu0 %v2260_v26 }
  0x41   : > { %2040 = vmatpush3.bf16.msra.mxu0 %v2169_v36 }
  0x42   : > { %2041 = vmatprep.subr.bf16.mxu0 %v2260_v26 }
  0x44   : > { %1966 = vmatmul.mubr.bf16.gmra.mxu0 %v2147_v13 }
  0x45   : > { %1969 = vmatprep.mubr.bf16.mxu0 %v2148_v14  ;;  %2042 = vmatpush3.bf16.msra.mxu0 %v2171_v37 }
  0x46   : > { %2043 = vmatprep.subr.bf16.mxu0 %v2260_v26 }
  0x4c   : > { %1970 = vmatmul.mubr.bf16.gmra.mxu0 %v2149_v15 }
  0x4d   : > { %1973 = vmatprep.mubr.bf16.mxu0 %v2150_v16 }
  0x54   : > { %1974 = vmatmul.mubr.bf16.gmra.mxu0 %v2151_v17 }
  0x55   : > { %1977 = vmatprep.mubr.bf16.mxu0 %v2152_v18 }
  0x5c   : > { %1978 = vmatmul.mubr.bf16.gmra.mxu0 %v2153_v19 }
  0x5d   : > { %1981 = vmatprep.mubr.bf16.mxu0 %v2154_v20 }
  0x64   : > { %1982 = vmatmul.mubr.bf16.gmra.mxu0 %v2155_v21 }
  0x65   : > { %1985 = vmatprep.mubr.bf16.mxu0 %v2156_v22 }
  0x6c   : > { %1986 = vmatmul.mubr.bf16.gmra.mxu0 %v2157_v23  ;;  %v2528_v23 = vsel %vm2515_vm6, %v897_v12, %v889_v7 }
  0xf4   : > { %v1959_v38 = vpop.f32.mrf.mxu0 }
  0xf5   : > { %v693_v62 = vmul.f32 %v1959_v38, %v2488_v58 }
  0xf6   : > { %v557_v39 = vpop.f32.mrf.mxu0 }
  0xf7   : > { %v691_v63 = vmul.f32 %v2488_v58, %v557_v39  ;;  %v732_v14 = vadd.f32 %v2503_v1, %v693_v62 }
  0xf8   : > { %v1960_v40 = vpop.f32.mrf.mxu0 }
  0xf9   : > { %v694_v2 = vmul.f32 %v1960_v40, %v2488_v58  ;;  %v730_v15 = vadd.f32 %v2503_v1, %v691_v63  ;;  %v764_v29 = vmax.f32 %v732_v14, 0.0 }
  0xfa   : > { %v560_v41 = vpop.f32.mrf.mxu0 }
  0xfb   : > { %v692_v3 = vmul.f32 %v2488_v58, %v560_v41  ;;  %v733_v17 = vadd.f32 %v2503_v1, %v694_v2  ;;  %v762_v30 = vmax.f32 %v730_v15, 0.0 }
  0xfc   : > { %v1963_v42 = vpop.f32.mrf.mxu0 }
  0xfd   : > { %v697_v8 = vmul.f32 %v1963_v42, %v2488_v58  ;;  %v731_v19 = vadd.f32 %v2503_v1, %v692_v3  ;;  %v765_v34 = vmax.f32 %v733_v17, 0.0 }
  0xfe   : > { %v573_v43 = vpop.f32.mrf.mxu0 }
  0xff   : > { %v695_v9 = vmul.f32 %v2488_v58, %v573_v43  ;;  %v2531_v24 = vadd.f32 %v2503_v1, %v697_v8  ;;  %v763_v38 = vmax.f32 %v731_v19, 0.0 }
 0x100   : > { %v1964_v44 = vpop.f32.mrf.mxu0 }
 0x101   : > { %v698_v18 = vmul.f32 %v1964_v44, %v2488_v58  ;;  %v2534_v25 = vadd.f32 %v2503_v1, %v695_v9  ;;  %v768_v43 = vmax.f32 %v2531_v24, 0.0 }
 0x102   : > { %v576_v45 = vpop.f32.mrf.mxu0 }
 0x103   : > { %v2541_v35 = vadd.f32 %v2503_v1, %v698_v18  ;;  %v696_v36 = vmul.f32 %v2488_v58, %v576_v45  ;;  %v766_v44 = vmax.f32 %v2534_v25, 0.0 }
 0x104   : > { %v1967_v46 = vpop.f32.mrf.mxu0 }
 0x105   : > { %v701_v4 = vmul.f32 %v1967_v46, %v2488_v58 }
 0x106   : > { %v589_v47 = vpop.f32.mrf.mxu0 }
 0x107   : > { %v699_v5 = vmul.f32 %v2488_v58, %v589_v47  ;;  %v740_v20 = vadd.f32 %v2503_v1, %v701_v4 }
 0x108   : > { %v1968_v48 = vpop.f32.mrf.mxu0 }
 0x109   : > { %v702_v10 = vmul.f32 %v1968_v48, %v2488_v58  ;;  %v738_v21 = vadd.f32 %v2503_v1, %v699_v5  ;;  %v772_v39 = vmax.f32 %v740_v20, 0.0 }
 0x10a   : > { %v592_v49 = vpop.f32.mrf.mxu0 }
 0x10b   : > { %v700_v11 = vmul.f32 %v2488_v58, %v592_v49  ;;  %v741_v27 = vadd.f32 %v2503_v1, %v702_v10  ;;  %v770_v40 = vmax.f32 %v738_v21, 0.0  ;;  %v796_v60 = vmax.f32 %v764_v29, %v772_v39 }
 0x10c   : > { %v1971_v50 = vpop.f32.mrf.mxu0 }
 0x10d   : > { %v739_v28 = vadd.f32 %v2503_v1, %v700_v11  ;;  %v705_v31 = vmul.f32 %v1971_v50, %v2488_v58  ;;  %v773_v46 = vmax.f32 %v741_v27, 0.0  ;;  %v794_v62 = vmax.f32 %v762_v30, %v770_v40 }
 0x10e   : > { %v605_v52 = vpop.f32.mrf.mxu0 }
 0x10f   : > { %v703_v32 = vmul.f32 %v2488_v58, %v605_v52  ;;  %v771_v47 = vmax.f32 %v739_v28, 0.0  ;;  %v2549_v48 = vadd.f32 %v2503_v1, %v705_v31  ;;  %v769_v52 = vmax.f32 %v2541_v35, 0.0 }
 0x110   : > { %v2476_v53 = vpop.f32.mrf.mxu0  ;;  %v797_v3 = vmax.f32 %v765_v34, %v773_v46 }
 0x111   : > { %v2552_v49 = vadd.f32 %v2503_v1, %v703_v32  ;;  %v706_v63 = vmul.f32 %v2476_v53, %v2488_v58  ;;  %v2565_v4 = vmax.f32 %v763_v38, %v771_v47  ;;  %v776_v7 = vmax.f32 %v2549_v48, 0.0 }
 0x112   : > { %v2480_v55 = vpop.f32.mrf.mxu0 }
 0x113   : > { %v774_v8 = vmax.f32 %v2552_v49, 0.0  ;;  %v2576_v17 = vadd.f32 %v2503_v1, %v706_v63  ;;  %v704_v31 = vmul.f32 %v2488_v58, %v2480_v55 }
 0x114   : > { %v1975_v56 = vpop.f32.mrf.mxu0 }
 0x115   : > { %v709_v37 = vmul.f32 %v1975_v56, %v2488_v58  ;;  %v2558_v56 = vadd.f32 %v2503_v1, %v696_v36 }
 0x116   : > { %v621_v59 = vpop.f32.mrf.mxu0 }
 0x117   : > { %v707_v41 = vmul.f32 %v2488_v58, %v621_v59  ;;  %v748_v57 = vadd.f32 %v2503_v1, %v709_v37 }
 0x118   : > { %v1976_v0 = vpop.f32.mrf.mxu0 }
 0x119   : > { %v710_v45 = vmul.f32 %v1976_v0, %v2488_v58  ;;  %v746_v2 = vadd.f32 %v2503_v1, %v707_v41  ;;  %v780_v53 = vmax.f32 %v748_v57, 0.0  ;;  %v777_v57 = vmax.f32 %v2576_v17, 0.0 }
 0x11a   : > { %v624_v6 = vpop.f32.mrf.mxu0  ;;  %v800_v17 = vmax.f32 %v768_v43, %v776_v7 }
 0x11b   : > { %v708_v50 = vmul.f32 %v2488_v58, %v624_v6  ;;  %v749_v9 = vadd.f32 %v2503_v1, %v710_v45  ;;  %v778_v18 = vmax.f32 %v746_v2, 0.0  ;;  %v801_v24 = vmax.f32 %v769_v52, %v777_v57 }
 0x11c   : > { %v1979_v16 = vpop.f32.mrf.mxu0 }
 0x11d   : > { %v747_v10 = vadd.f32 %v2503_v1, %v708_v50  ;;  %v713_v19 = vmul.f32 %v1979_v16, %v2488_v58  ;;  %v781_v32 = vmax.f32 %v749_v9, 0.0 }
 0x11e   : > { %v637_v22 = vpop.f32.mrf.mxu0 }
 0x11f   : > { %v711_v20 = vmul.f32 %v2488_v58, %v637_v22  ;;  %v779_v34 = vmax.f32 %v747_v10, 0.0  ;;  %v752_v55 = vadd.f32 %v2503_v1, %v713_v19 }
 0x120   : > { %v1980_v33 = vpop.f32.mrf.mxu0 }
 0x121   : > { %v714_v16 = vmul.f32 %v1980_v33, %v2488_v58  ;;  %v750_v40 = vadd.f32 %v2503_v1, %v711_v20 }
 0x122   : > { %v640_v42 = vpop.f32.mrf.mxu0 }
 0x123   : > { %v712_v33 = vmul.f32 %v2488_v58, %v640_v42  ;;  %v753_v42 = vadd.f32 %v2503_v1, %v714_v16  ;;  %v782_v9 = vmax.f32 %v750_v40, 0.0 }
 0x124   : > { %v1983_v51 = vpop.f32.mrf.mxu0 }
 0x125   : > { %v717_v59 = vmul.f32 %v1983_v51, %v2488_v58  ;;  %v751_v10 = vadd.f32 %v2503_v1, %v712_v33 }
 0x126   : > { %v653_v0 = vpop.f32.mrf.mxu0 }
 0x127   : > { %v756_v5 = vadd.f32 %v2503_v1, %v717_v59  ;;  %v715_v6 = vmul.f32 %v2488_v58, %v653_v0  ;;  %v743_v59 = vadd.f32 %v2503_v1, %v704_v31  ;;  %v783_v43 = vmax.f32 %v751_v10, 0.0 }
 0x128   : > { %v1984_v11 = vpop.f32.mrf.mxu0 }
 0x129   : > { %v788_v12 = vmax.f32 %v756_v5, 0.0  ;;  %v754_v14 = vadd.f32 %v2503_v1, %v715_v6  ;;  %v718_v15 = vmul.f32 %v1984_v11, %v2488_v58  ;;  %v784_v6 = vmax.f32 %v752_v55, 0.0  ;;  %v2172_v55 = vld [vmem:[%s3034_s7 + $0x30] sm:$0xff]  }
 0x12a   : > { %v656_v21 = vpop.f32.mrf.mxu0  ;;  %v775_v19 = vmax.f32 %v743_v59, 0.0 }
 0x12b   : > { %v804_v27 = vmax.f32 %v780_v53, %v788_v12  ;;  %v786_v28 = vmax.f32 %v754_v14, 0.0  ;;  %v757_v29 = vadd.f32 %v2503_v1, %v718_v15  ;;  %v716_v30 = vmul.f32 %v2488_v58, %v656_v21 }
 0x12c   : > { %v1987_v36 = vpop.f32.mrf.mxu0  ;;  %v785_v21 = vmax.f32 %v753_v42, 0.0 }
 0x12d   : > { %v2589_v22 = vmax.f32 %v796_v60, %v804_v27  ;;  %v802_v37 = vmax.f32 %v778_v18, %v786_v28  ;;  %v789_v38 = vmax.f32 %v757_v29, 0.0  ;;  %v755_v39 = vadd.f32 %v2503_v1, %v716_v30 }
 0x12e   : > { %v721_v41 = vmul.f32 %v1987_v36, %v2488_v58  ;;  %v669_v46 = vpop.f32.mrf.mxu0  ;;  %v798_v18 = vmax.f32 %v766_v44, %v774_v8 }
 0x12f   : > { %851 = vst [vmem:[#allocation2 + $0x50] sm:$0xff] %v2589_v22  ;;  %v2599_v47 = vmax.f32 %v794_v62, %v802_v37  ;;  %v805_v45 = vmax.f32 %v781_v32, %v789_v38  ;;  %v787_v50 = vmax.f32 %v755_v39, 0.0  ;;  %v719_v51 = vmul.f32 %v2488_v58, %v669_v46 }
 0x130   : > { %v760_v60 = vadd.f32 %v2503_v1, %v721_v41  ;;  %v1988_v63 = vpop.f32.mrf.mxu0 }
 0x131   : > { %849 = vst [vmem:[#allocation2 + $0x20] sm:$0xff] %v2599_v47  ;;  %v2610_v62 = vmax.f32 %v797_v3, %v805_v45  ;;  %v803_v2 = vmax.f32 %v779_v34, %v787_v50  ;;  %v758_v0 = vadd.f32 %v2503_v1, %v719_v51  ;;  %v722_v5 = vmul.f32 %v1988_v63, %v2488_v58 }
 0x132   : > { %v792_v11 = vmax.f32 %v760_v60, 0.0  ;;  %v672_v53 = vpop.f32.mrf.mxu0  ;;  %v2176_v60 = vld [vmem:[%s3034_s7 + $0x18] sm:$0xff]  }
 0x133   : > { %852 = vst [vmem:[#allocation2 + $0x68] sm:$0xff] %v2610_v62  ;;  %v2617_v12 = vmax.f32 %v2565_v4, %v803_v2  ;;  %v790_v14 = vmax.f32 %v758_v0, 0.0  ;;  %v761_v3 = vadd.f32 %v2503_v1, %v722_v5  ;;  %v720_v15 = vmul.f32 %v2488_v58, %v672_v53 }
 0x134   : > { %v808_v20 = vmax.f32 %v784_v6, %v792_v11  ;;  %v767_v58 = vmax.f32 %v2558_v56, 0.0 }
 0x135   : > { %850 = vst [vmem:[#allocation2 + $0x38] sm:$0xff] %v2617_v12  ;;  %v806_v4 = vmax.f32 %v782_v9, %v790_v14  ;;  %v793_v27 = vmax.f32 %v761_v3, 0.0  ;;  %v759_v28 = vadd.f32 %v2503_v1, %v720_v15 }
 0x136   : > { %v2634_v48 = vmax.f32 %v800_v17, %v808_v20  ;;  %v975_v44 = vld [vmem:[#allocation2 + $0x4f] sm:$0xff]  ;;  %v799_v56 = vmax.f32 %v767_v58, %v775_v19 }
 0x137   : > { %v2644_v49 = vmax.f32 %v798_v18, %v806_v4  ;;  %v809_v1 = vmax.f32 %v785_v21, %v793_v27  ;;  %v791_v7 = vmax.f32 %v759_v28, 0.0  ;;  %v873_v52 = vsel %vm868_vm0, %v975_v44, 0.0  ;;  %v1013_v36 = vld [vmem:[#allocation2 + $0x51] sm:$0xff] }
 0x138   : > { %855 = vst [vmem:[#allocation2 + $0xb0] sm:$0xff] %v2634_v48  ;;  %v860_v8 = vld [vmem:[#allocation2 + $0x1f] sm:$0xff]  ;;  %v892_v30 = vsel %vm2492_vm3, %v2589_v22, %v873_v52 }
 0x139   : > { %853 = vst [vmem:[#allocation2 + $0x80] sm:$0xff] %v2644_v49  ;;  %v2671_v31 = vmax.f32 %v801_v24, %v809_v1  ;;  %v807_v32 = vmax.f32 %v783_v43, %v791_v7  ;;  %v871_v34 = vsel %vm868_vm0, %v860_v8, 0.0  ;;  %v927_v16 = vsel %vm2640_vm1, %v860_v8, %v2528_v23  ;;  %v898_v38 = vld [vmem:[#allocation2 + $0x21] sm:$0xff] }
 0x13a   : > { %v890_v37 = vsel %vm2492_vm3, %v2599_v47, %v871_v34  ;;  %v946_v39 = vsel %vm2650_vm2, %v2599_v47, %v927_v16  ;;  %v911_v23 = vsel %vm2515_vm6, %v1013_v36, %v892_v30  ;;  %v919_v40 = vld [vmem:[#allocation2 + $0x67] sm:$0xff] }
 0x13b   : > { %856 = vst [vmem:[#allocation2 + $0xc8] sm:$0xff] %v2671_v31  ;;  %v2696_v33 = vmax.f32 %v799_v56, %v807_v32  ;;  %v909_v41 = vsel %vm2515_vm6, %v898_v38, %v890_v37  ;;  %v965_v46 = vsel %vm2661_vm4, %v898_v38, %v946_v39  ;;  %v930_v45 = vsel %vm2640_vm1, %v919_v40, %v911_v23  ;;  %v957_v9 = vld [vmem:[#allocation2 + $0x69] sm:$0xff]  ;;  %v2170_v39 = vld [vmem:[%s3034_s7 + $0x38] sm:$0xff]   ;;  %v2175_v47 = vld [vmem:[%s3034_s7 + $0x20] sm:$0xff]  }
 0x13c   : > { %v917_v50 = vld [vmem:[#allocation2 + $0x37] sm:$0xff]  ;;  %v949_v51 = vsel %vm2650_vm2, %v2610_v62, %v930_v45  ;;  %v874_v57 = vsel %vm868_vm0, %v919_v40, 0.0 }
 0x13d   : > { %854 = vst [vmem:[#allocation2 + $0x98] sm:$0xff] %v2696_v33  ;;  %v928_v59 = vsel %vm2640_vm1, %v917_v50, %v909_v41  ;;  %v985_v42 = vsel %vm2688_vm8, %v917_v50, %v965_v46  ;;  %v872_v63 = vsel %vm868_vm0, %v917_v50, 0.0  ;;  %v955_v0 = vld [vmem:[#allocation2 + $0x39] sm:$0xff]  ;;  %v968_v53 = vsel %vm2661_vm4, %v957_v9, %v949_v51 }
 0x13e   : > { %v947_v2 = vsel %vm2650_vm2, %v2617_v12, %v928_v59  ;;  %v1004_v5 = vsel %vm2706_vm10, %v2617_v12, %v985_v42  ;;  %v891_v6 = vsel %vm2492_vm3, %v2617_v12, %v872_v63  ;;  %v893_v14 = vsel %vm2492_vm3, %v2610_v62, %v874_v57 }
 0x13f   : > { %v966_v10 = vsel %vm2661_vm4, %v955_v0, %v947_v2  ;;  %v910_v11 = vsel %vm2515_vm6, %v955_v0, %v891_v6  ;;  %v979_v3 = vld [vmem:[#allocation2 + $0xaf] sm:$0xff]  ;;  %v1023_v12 = vsel %vm2726_vm11, %v955_v0, %v1004_v5  ;;  %v912_v7 = vsel %vm2515_vm6, %v957_v9, %v893_v14  ;;  %v981_v2 = vld [vmem:[#allocation2 + $0xdf] sm:$0xff] }
 0x140   : > { %v986_v15 = vsel %vm2688_vm8, %v975_v44, %v966_v10  ;;  %v929_v17 = vsel %vm2640_vm1, %v975_v44, %v910_v11  ;;  %v977_v18 = vld [vmem:[#allocation2 + $0x7f] sm:$0xff]  ;;  %v877_v19 = vsel %vm868_vm0, %v979_v3, 0.0  ;;  %v1017_v45 = vld [vmem:[#allocation2 + $0xb1] sm:$0xff] }
 0x141   : > { %v1005_v20 = vsel %vm2706_vm10, %v2589_v22, %v986_v15  ;;  %v948_v21 = vsel %vm2650_vm2, %v2589_v22, %v929_v17  ;;  %v988_v4 = vsel %vm2688_vm8, %v977_v18, %v968_v53  ;;  %v875_v27 = vsel %vm868_vm0, %v977_v18, 0.0  ;;  %v1015_v43 = vld [vmem:[#allocation2 + $0x81] sm:$0xff]  ;;  %v2174_v17 = vld [vmem:[%s3034_s7 + $0x50] sm:$0xff]  }
 0x142   : > { %v1024_v28 = vsel %vm2726_vm11, %v1013_v36, %v1005_v20  ;;  %v967_v58 = vsel %vm2661_vm4, %v1013_v36, %v948_v21  ;;  %v1007_v24 = vsel %vm2706_vm10, %v2644_v49, %v988_v4  ;;  %v894_v22 = vsel %vm2492_vm3, %v2644_v49, %v875_v27  ;;  %v923_v38 = vld [vmem:[#allocation2 + $0xc7] sm:$0xff]  ;;  %2044 = vmatpush3.bf16.msra.mxu0 %v2174_v17  ;;  %v1783_v27 = vld [vmem:[%s3032_s5] ss:$0 sm:$0xff] }
 0x143   : > { %v1031_v44 = vpack.c.bf16 %v1024_v28, %v1023_v12  ;;  %v987_v1 = vsel %vm2688_vm8, %v919_v40, %v967_v58  ;;  %v913_v52 = vsel %vm2515_vm6, %v1015_v43, %v894_v22  ;;  %v1026_v8 = vsel %vm2726_vm11, %v1015_v43, %v1007_v24  ;;  %v1019_v11 = vld [vmem:[#allocation2 + $0xe1] sm:$0xff]  ;;  %2045 = vmatprep.subr.bf16.mxu0 %v2260_v26  ;;  %v1784_v24 = vld [vmem:[%s3033_s6] ss:$0 sm:$0xff] }
 0x144   : > { %v1006_v56 = vsel %vm2706_vm10, %v2610_v62, %v987_v1  ;;  %v921_v30 = vld [vmem:[#allocation2 + $0x97] sm:$0xff]  ;;  %v931_v32 = vsel %vm2640_vm1, %v977_v18, %v912_v7  ;;  %v896_v34 = vsel %vm2492_vm3, %v2634_v48, %v877_v19  ;;  %v2179_v19 = vld [vmem:[%s3034_s7 + $0x8] sm:$0xff]   ;;  %v2181_v21 = vld [vmem:[%s3034_s7] sm:$0xff]  }
 0x145   : > { %2005 = vmatprep.mubr.bf16.mxu1 %v1031_v44  ;;  %v1025_v16 = vsel %vm2726_vm11, %v957_v9, %v1006_v56  ;;  %v932_v36 = vsel %vm2640_vm1, %v921_v30, %v913_v52  ;;  %v950_v62 = vsel %vm2650_vm2, %v2644_v49, %v931_v32  ;;  %v876_v37 = vsel %vm868_vm0, %v921_v30, 0.0  ;;  %v959_v41 = vld [vmem:[#allocation2 + $0x99] sm:$0xff]  ;;  %v2178_v18 = vld [vmem:[%s3034_s7 + $0x10] sm:$0xff]   ;;  %v2177_v20 = vld [vmem:[%s3034_s7 + $0x48] sm:$0xff]  }
 0x146   : > { %v1032_v23 = vpack.c.bf16 %v1026_v8, %v1025_v16  ;;  %v951_v40 = vsel %vm2650_vm2, %v2696_v33, %v932_v36  ;;  %v969_v46 = vsel %vm2661_vm4, %v1015_v43, %v950_v62  ;;  %v895_v54 = vsel %vm2492_vm3, %v2696_v33, %v876_v37  ;;  %2046 = vmatpush3.bf16.msra.mxu0 %v2177_v20  ;;  %v2180_v4 = vld [vmem:[%s3034_s7 + $0x40] sm:$0xff]   ;;  %v2187_v17 = vld [vmem:[%s3034_s7 + $0xe8] sm:$0xff]  }
 0x147   : > { %v970_v49 = vsel %vm2661_vm4, %v959_v41, %v951_v40  ;;  %v989_v50 = vsel %vm2688_vm8, %v921_v30, %v969_v46  ;;  %v914_v51 = vsel %vm2515_vm6, %v959_v41, %v895_v54  ;;  %v915_v57 = vsel %vm2515_vm6, %v1017_v45, %v896_v34  ;;  %2047 = vmatprep.subr.bf16.mxu0 %v2260_v26 }
 0x148   : > { %2006 = vmatmul.mubr.bf16.vlgmr.msra.gmra.mxu1 %v1032_v23  ;;  %v990_v59 = vsel %vm2688_vm8, %v979_v3, %v970_v49  ;;  %v1008_v61 = vsel %vm2706_vm10, %v2696_v33, %v989_v50  ;;  %v933_v42 = vsel %vm2640_vm1, %v979_v3, %v914_v51  ;;  %v934_v63 = vsel %vm2640_vm1, %v923_v38, %v915_v57  ;;  %v961_v33 = vld [vmem:[#allocation2 + $0xc9] sm:$0xff] }
 0x149   : > { %v1009_v13 = vsel %vm2706_vm10, %v2634_v48, %v990_v59  ;;  %v952_v0 = vsel %vm2650_vm2, %v2634_v48, %v933_v42  ;;  %v953_v5 = vsel %vm2650_vm2, %v2671_v31, %v934_v63  ;;  %2014 = vmatpush3.bf16.msra.mxu1 %v2170_v39  ;;  %v1027_v6 = vsel %vm2726_vm11, %v959_v41, %v1008_v61 }
 0x14a   : > { %v1028_v25 = vsel %vm2726_vm11, %v1017_v45, %v1009_v13  ;;  %v971_v9 = vsel %vm2661_vm4, %v1017_v45, %v952_v0  ;;  %v972_v10 = vsel %vm2661_vm4, %v961_v33, %v953_v5  ;;  %2015 = vmatprep.subr.bf16.mxu1 %v2260_v26  ;;  %vm2261_vm0 = vmmov 0   ;;  %2048 = vmatpush3.bf16.msra.mxu0 %v2180_v4 }
 0x14b   : > { %v1033_v48 = vpack.c.bf16 %v1028_v25, %v1027_v6  ;;  %v991_v35 = vsel %vm2688_vm8, %v923_v38, %v971_v9  ;;  %v992_v53 = vsel %vm2688_vm8, %v981_v2, %v972_v10  ;;  %2049 = vmatprep.mubr.msk.bf16.mxu0 %vm2261_vm0, %v2260_v26  ;;  %2073 = vmatprep.subr.bf16.mxu0 %v2260_v26  ;;  %v2182_v10 = vld [vmem:[%s3034_s7 + $0xb8] sm:$0xff]  }
 0x14c   : > { %v1010_v14 = vsel %vm2706_vm10, %v2671_v31, %v991_v35  ;;  %v1011_v3 = vsel %vm2706_vm10, 0.0, %v992_v53  ;;  %v2173_v31 = vld [vmem:[%s3034_s7 + $0x28] sm:$0xff]   ;;  %v2183_v53 = vld [vmem:[%s3034_s7 + $0xf8] sm:$0xff]  }
 0x14d   : > { %2009 = vmatprep.mubr.bf16.mxu1 %v1033_v48  ;;  %v1029_v29 = vsel %vm2726_vm11, %v961_v33, %v1010_v14  ;;  %v1030_v15 = vsel %vm2726_vm11, %v1019_v11, %v1011_v3  ;;  %2016 = vmatpush3.bf16.msra.mxu1 %v2172_v55  ;;  %v2185_v55 = vld [vmem:[%s3034_s7 + $0xf0] sm:$0xff]  }
 0x14e   : > { %v1034_v12 = vpack.c.bf16 %v1030_v15, %v1029_v29  ;;  %2017 = vmatprep.subr.bf16.mxu1 %v2260_v26  ;;  %v2184_v15 = vld [vmem:[%s3034_s7 + $0xb0] sm:$0xff]  }
 0x150   : > { %2010 = vmatmul.mubr.bf16.gmra.mxu1 %v1034_v12 }
 0x151   : > { %2018 = vmatpush3.bf16.msra.mxu1 %v2173_v31  ;;  %2029 = vmatprep.mubr.msk.bf16.mxu1 %vm2261_vm0, %v2260_v26 }
 0x152   : > { %2019 = vmatprep.subr.bf16.mxu1 %v2260_v26 }
 0x155   : > { %2020 = vmatpush3.bf16.msra.mxu1 %v2175_v47  ;;  %v2186_v47 = vld [vmem:[%s3034_s7 + $0xa8] sm:$0xff]  }
 0x156   : > { %2021 = vmatprep.subr.bf16.mxu1 %v2260_v26 }
 0x159   : > { %2022 = vmatpush3.bf16.msra.mxu1 %v2176_v60 }
 0x15a   : > { %2023 = vmatprep.subr.bf16.mxu1 %v2260_v26 }
 0x15d   : > { %2024 = vmatpush3.bf16.msra.mxu1 %v2178_v18 }
 0x15e   : > { %2025 = vmatprep.subr.bf16.mxu1 %v2260_v26 }
 0x161   : > { %2026 = vmatpush3.bf16.msra.mxu1 %v2179_v19  ;;  %v2188_v19 = vld [vmem:[%s3034_s7 + $0xa0] sm:$0xff]  }
 0x162   : > { %2027 = vmatprep.subr.bf16.mxu1 %v2260_v26 }
 0x165   : > { %2028 = vmatpush3.bf16.msra.mxu1 %v2181_v21  ;;  %v2189_v21 = vld [vmem:[%s3034_s7 + $0xe0] sm:$0xff]  }
 0x166   : > { %2053 = vmatprep.subr.bf16.mxu1 %v2260_v26 }
 0x208   : > { %v2007_v28 = vpop.f32.mrf.mxu1 }
 0x209   : > { %v1173_v58 = vmul.f32 %v2007_v28, %v1783_v27  ;;  %v2190_v28 = vld [vmem:[%s3034_s7 + $0x98] sm:$0xff]  }
 0x20a   : > { %v1133_v43 = vpop.f32.mrf.mxu1 }
 0x20b   : > { %v1171_v22 = vmul.f32 %v1783_v27, %v1133_v43  ;;  %v1188_v1 = vadd.f32 %v1784_v24, %v1173_v58  ;;  %v2191_v58 = vld [vmem:[%s3034_s7 + $0xd8] sm:$0xff]   ;;  %v2192_v43 = vld [vmem:[%s3034_s7 + $0x90] sm:$0xff]  }
 0x20c   : > { %v2008_v44 = vpop.f32.mrf.mxu1 }
 0x20d   : > { %v1174_v7 = vmul.f32 %v2008_v44, %v1783_v27  ;;  %v1186_v56 = vadd.f32 %v1784_v24, %v1171_v22  ;;  %v1196_v34 = vmax.f32 %v1188_v1, 0.0  ;;  %v2193_v44 = vld [vmem:[%s3034_s7 + $0xd0] sm:$0xff]  }
 0x20e   : > { %v1136_v52 = vpop.f32.mrf.mxu1 }
 0x20f   : > { %v1189_v8 = vadd.f32 %v1784_v24, %v1174_v7  ;;  %v1172_v30 = vmul.f32 %v1783_v27, %v1136_v52  ;;  %v1194_v37 = vmax.f32 %v1186_v56, 0.0  ;;  %v2194_v7 = vld [vmem:[%s3034_s7 + $0x88] sm:$0xff]  }
 0x210   : > { %v2011_v32 = vpop.f32.mrf.mxu1  ;;  %v2195_v52 = vld [vmem:[%s3034_s7 + $0xc8] sm:$0xff]  }
 0x211   : > { %v1197_v16 = vmax.f32 %v1189_v8, 0.0  ;;  %v1187_v36 = vadd.f32 %v1784_v24, %v1172_v30  ;;  %v1177_v2 = vmul.f32 %v2011_v32, %v1783_v27  ;;  %v2196_v8 = vld [vmem:[%s3034_s7 + $0x80] sm:$0xff]  }
 0x212   : > { %v1149_v62 = vpop.f32.mrf.mxu1  ;;  %v2197_v30 = vld [vmem:[%s3034_s7 + $0xc0] sm:$0xff]  }
 0x213   : > { %v1204_v38 = vmax.f32 %v1196_v34, %v1197_v16  ;;  %v1195_v39 = vmax.f32 %v1187_v36, 0.0  ;;  %v1175_v59 = vmul.f32 %v1783_v27, %v1149_v62  ;;  %v1192_v6 = vadd.f32 %v1784_v24, %v1177_v2 }
 0x214   : > { %v2012_v23 = vpop.f32.mrf.mxu1 }
 0x215   : > { %v1208_v40 = vrot.slane %v1204_v38, 1  ;;  %v1203_v41 = vmax.f32 %v1194_v37, %v1195_v39  ;;  %v1178_v61 = vmul.f32 %v2012_v23, %v1783_v27  ;;  %v1190_v0 = vadd.f32 %v1784_v24, %v1175_v59 }
 0x216   : > { %v1152_v46 = vpop.f32.mrf.mxu1  ;;  %v1200_v14 = vmax.f32 %v1192_v6, 0.0 }
 0x217   : > { %v1207_v45 = vrot.slane %v1203_v41, 1  ;;  %v1212_v54 = vmax.f32 %v1204_v38, %v1208_v40  ;;  %v1176_v50 = vmul.f32 %v1783_v27, %v1152_v46  ;;  %v1193_v5 = vadd.f32 %v1784_v24, %v1178_v61 }
 0x218   : > { %v1198_v11 = vmax.f32 %v1190_v0, 0.0 }
 0x219   : > { %v1211_v49 = vmax.f32 %v1203_v41, %v1207_v45  ;;  %v1219_v42 = vrot.slane %v1212_v54, 2  ;;  %v1191_v13 = vadd.f32 %v1784_v24, %v1176_v50  ;;  %v1201_v48 = vmax.f32 %v1193_v5, 0.0 }
 0x21b   : > { %v1213_v51 = vadd.f32 %v1212_v54, %v1211_v49  ;;  %v1215_v57 = vrot.slane %v1211_v49, 2  ;;  %v1199_v25 = vmax.f32 %v1191_v13, 0.0  ;;  %v1439_v12 = vmax.f32 %v1200_v14, %v1201_v48 }
 0x21d   : > { %v1217_v63 = vadd.f32 %v1215_v57, %v1213_v51  ;;  %v1438_v3 = vmax.f32 %v1198_v11, %v1199_v25  ;;  %v1443_v60 = vrot.slane %v1439_v12, 1 }
 0x21f   : > { %v1221_v33 = vadd.f32 %v1219_v42, %v1217_v63  ;;  %v1442_v31 = vrot.slane %v1438_v3, 1  ;;  %v1447_v20 = vmax.f32 %v1439_v12, %v1443_v60 }
 0x221   : > { %v1222_v9 = vmul.f32 0.25, %v1221_v33  ;;  %v1446_v18 = vmax.f32 %v1438_v3, %v1442_v31  ;;  %v1454_v22 = vrot.slane %v1447_v20, 2 }
 0x223   : > { %v1223_v35 = vpack.c.bf16 %v1222_v9, %v1222_v9  ;;  %v1448_v4 = vadd.f32 %v1447_v20, %v1446_v18  ;;  %v1450_v27 = vrot.slane %v1446_v18, 2 }
 0x225   : > { %2030 = vmatmul.mubr.bf16.vlgmr.msra.gmra.mxu1 %v1223_v35  ;;  %v1347_v29 = vrot.slane %v1223_v35, 2  ;;  %v1452_v24 = vadd.f32 %v1450_v27, %v1448_v4 }
 0x226   : > { %2054 = vmatpush3.bf16.msra.mxu1 %v2182_v10  ;;  %2069 = vmatprep.mubr.msk.bf16.mxu1 %vm2261_vm0, %v2260_v26 }
 0x227   : > { %2050 = vmatmul.mubr.bf16.vlgmr.msra.gmra.mxu0 %v1347_v29  ;;  %2055 = vmatprep.subr.bf16.mxu1 %v2260_v26  ;;  %v1456_v1 = vadd.f32 %v1454_v22, %v1452_v24 }
 0x228   : > { %2074 = vmatpush3.bf16.msra.mxu0 %v2183_v53  ;;  %2089 = vmatprep.mubr.msk.bf16.mxu0 %vm2261_vm0, %v2260_v26 }
 0x229   : > { %2075 = vmatprep.subr.bf16.mxu0 %v2260_v26  ;;  %v1457_v56 = vmul.f32 0.25, %v1456_v1 }
 0x22a   : > { %2056 = vmatpush3.bf16.msra.mxu1 %v2184_v15 }
 0x22b   : > { %2057 = vmatprep.subr.bf16.mxu1 %v2260_v26  ;;  %v1458_v32 = vpack.c.bf16 %v1457_v56, %v1457_v56 }
 0x22c   : > { %2076 = vmatpush3.bf16.msra.mxu0 %v2185_v55 }
 0x22d   : > { %2077 = vmatprep.subr.bf16.mxu0 %v2260_v26  ;;  %v1583_v34 = vrot.slane %v1458_v32, 2 }
 0x22e   : > { %2058 = vmatpush3.bf16.msra.mxu1 %v2186_v47 }
 0x22f   : > { %2059 = vmatprep.subr.bf16.mxu1 %v2260_v26 }
 0x230   : > { %2078 = vmatpush3.bf16.msra.mxu0 %v2187_v17 }
 0x231   : > { %2079 = vmatprep.subr.bf16.mxu0 %v2260_v26 }
 0x232   : > { %2060 = vmatpush3.bf16.msra.mxu1 %v2188_v19 }
 0x233   : > { %2061 = vmatprep.subr.bf16.mxu1 %v2260_v26 }
 0x234   : > { %2080 = vmatpush3.bf16.msra.mxu0 %v2189_v21 }
 0x235   : > { %2081 = vmatprep.subr.bf16.mxu0 %v2260_v26 }
 0x236   : > { %2062 = vmatpush3.bf16.msra.mxu1 %v2190_v28 }
 0x237   : > { %2063 = vmatprep.subr.bf16.mxu1 %v2260_v26 }
 0x238   : > { %2082 = vmatpush3.bf16.msra.mxu0 %v2191_v58 }
 0x239   : > { %2083 = vmatprep.subr.bf16.mxu0 %v2260_v26 }
 0x23a   : > { %2064 = vmatpush3.bf16.msra.mxu1 %v2192_v43 }
 0x23b   : > { %2065 = vmatprep.subr.bf16.mxu1 %v2260_v26 }
 0x23c   : > { %2084 = vmatpush3.bf16.msra.mxu0 %v2193_v44 }
 0x23d   : > { %2085 = vmatprep.subr.bf16.mxu0 %v2260_v26 }
 0x23e   : > { %2066 = vmatpush3.bf16.msra.mxu1 %v2194_v7 }
 0x23f   : > { %2067 = vmatprep.subr.bf16.mxu1 %v2260_v26 }
 0x240   : > { %2086 = vmatpush3.bf16.msra.mxu0 %v2195_v52 }
 0x241   : > { %2087 = vmatprep.subr.bf16.mxu0 %v2260_v26  ;;  %v1202_v26 = vld [vmem:[%s3035_s8] sm:$0x1] }
 0x242   : > { %2068 = vmatpush3.bf16.msra.mxu1 %v2196_v8 }
 0x244   : > { %2088 = vmatpush3.bf16.msra.mxu0 %v2197_v30 }
 0x245   : > { %2070 = vmatmul.mubr.bf16.vlgmr.msra.gmra.mxu1 %v1458_v32 }
 0x247   : > { %2090 = vmatmul.mubr.bf16.vlgmr.msra.gmra.mxu0 %v1583_v34 }
 0x2e5   : > { %v1322_v16 = vpop.f32.mrf.mxu1 }
 0x2e6   : > { %v1328_v41 = vadd.f32 %v1322_v16, %v1202_v26 }
 0x2e7   : > { %v2031_v36 = vpop.f32.mrf.mxu1  ;;  %v1431_v62 = vpop.f32.mrf.mxu0 }
 0x2e8   : > { %v1437_v46 = vadd.f32 %v1431_v62, %v1328_v41 }
 0x2e9   : > { %v1325_v37 = vpop.f32.mrf.mxu1  ;;  %v2051_v38 = vpop.f32.mrf.mxu0 }
 0x2eb   : > { %v2032_v39 = vpop.f32.mrf.mxu1  ;;  %v1434_v23 = vpop.f32.mrf.mxu0 }
 0x2ed   : > { %v2052_v40 = vpop.f32.mrf.mxu0 }
 0x305   : > { %v1558_v45 = vpop.f32.mrf.mxu1 }
 0x306   : > { %v1564_v54 = vadd.f32 %v1558_v45, %v1437_v46 }
 0x307   : > { %v2071_v49 = vpop.f32.mrf.mxu1  ;;  %v1667_v50 = vpop.f32.mrf.mxu0 }
 0x308   : > { %v1673_v51 = vadd.f32 %v1667_v50, %v1564_v54 }
 0x309   : > { %v1561_v57 = vpop.f32.mrf.mxu1  ;;  %v2091_v59 = vpop.f32.mrf.mxu0 }
 0x30a   : > { %1674 = vst [vmem:[%s324_s26] sm:$0x1] %v1673_v51 }
 0x30b   : > { %v2072_v61 = vpop.f32.mrf.mxu1  ;;  %v1670_v42 = vpop.f32.mrf.mxu0 }
 0x30c   : > { %2211 = shalt.err (!%p2208_p3)
}
 0x30d   : > { %s2212_s23 = scalar_lea.hbm %s2986_s14, 16  ;;  %s2216_s26 = scalar_lea.hbm %s3036_s9, 32 }
 0x30e   : > { %p2213_p4 = scmp.ne.s32.totalorder %s2986_s14, %s2212_s23  ;;  %p2217_p9 = scmp.lt.s32.totalorder %s2986_s14, %s3036_s9 }
 0x30f   : > { %p2218_p10 = scmp.lt.s32.totalorder %s2216_s26, %s2212_s23 }
 0x310   : > { %p2214_p7 = pnand %p2213_p4, %p2351_p5 }
 0x311   : > { %p2219_p11 = por %p2218_p10, %p2217_p9 }
 0x312   : > { %p2215_p8 = pneg %p2214_p7 }
 0x314   : > { %p2220_p12 = pnand %p2219_p11, %p2215_p8 }
 0x316   : > { %2223 = shalt.err (!%p2220_p12)
}
 0x317   : > { %2093 = dma.vmem_to_hbm [thread:$0]  (%p2351_p5), %s2988_s27, 16, %s2986_s14, %s1676_s13   ;;  %v2092_v63 = vpop.f32.mrf.mxu0 }
 0x318 PF: > { %p2099_p13 = scmp.ge.s32.totalorder %s2258_s12, 2  ;;  %s1700_s17 = sand.u32 1, %s2246_s30  }
 0x319   : > { %s1701_s21 = scalar_lea.sflag [#allocation4], %s1700_s17 }
 0x31a   : > { %p2096_p0 = pnand %p2099_p13, %p2355_p6 }
 0x31c   : > { %p2097_p1 = pneg %p2096_p0 }
 0x31e   : > { %2241 = dma.done.wait (%p2097_p1), %s1701_s21, 16  }
 0x31f   : > { %2243 = vsyncadd (%p2097_p1), %s1701_s21, 4294967280  ;;  %p19_p2 = scmp.ge.s32.totalorder %s2338_s15, 4   ;;  %s3055_s30 = smov %s2250_s10 }
 0x320   : > { %s3056_s10 = smov %s2254_s11  ;;  %s3057_s11 = smov %s2349_s18 }
 0x321   : > { %s3058_s12 = smov %s2338_s15  ;;  %21 = sbr.rel (!%p19_p2) target bundleno = 3 (0x3), region = 96 }
 0x326   :  { %1705 = vsyncpa [#allocation4], 1 }
 0x327   :  { %1707 = vsyncpa [#allocation4 + $0x1], 1 }

</bundles_post_ra>
